<compile_context>
chip_gen: v7x
topology: tpu7x:2x2x1
jax: 0.10.0
libtpu: 0.0.40
codegen_flags: <defaults>
</compile_context>

<pallas_src>
import numpy as np

import jax
import jax.numpy as jnp
from jax import lax
from jax.experimental import pallas as pl
from jax.experimental.pallas import tpu as pltpu


# ----------------------------------------------------------------------------
# Pallas kernel: entire hourglass_1 forward for ONE batch sample per grid step
# ----------------------------------------------------------------------------
def _hourglass_kernel(x_ref, em1_ref, em2_ref,
                      p1_ref, g1_ref,
                      p2_ref, g2_ref,
                      p3_ref, g3x_ref, g3e_ref,
                      p4_ref, g4_ref,
                      p5_ref, g5x_ref, g5e_ref, b5_ref,
                      p6_ref, g6_ref, b6_ref,
                      out_ref, x2_ref, x4_ref):
    """All activations use a merged (H, W*C) layout (lane index = w*C + c)."""

    def conv(x, p_ref, g_ref):
        # sum over the 3 vertical taps of  P_ky @ (X @ G_ky)  -- pure 2D matmuls.
        acc = None
        for ky in range(3):
            t = jnp.dot(x, g_ref[ky], preferred_element_type=jnp.float32)
            t = jnp.dot(p_ref[ky], t, preferred_element_type=jnp.float32)
            acc = t if acc is None else acc + t
        return acc

    x0 = x_ref[0]      # (H,  W*C)
    e1 = em1_ref[0]    # (H/2, (W/2)*C)
    e2 = em2_ref[0]    # (H/4, (W/4)*2C)

    # conv1: 3x3 stride-2 + ReLU
    a1 = jnp.maximum(conv(x0, p1_ref, g1_ref), 0.0)
    # conv2: 3x3 stride-1, then F.relu
    a2 = jnp.maximum(conv(a1, p2_ref, g2_ref), 0.0)
    # conv3 on cat(a2, em1): weight split by input-channel block, shared P
    a3 = jnp.maximum(conv(a2, p3_ref, g3x_ref) + conv(e1, p3_ref, g3e_ref), 0.0)
    # conv4: 3x3 stride-1, then F.relu
    a4 = jnp.maximum(conv(a3, p4_ref, g4_ref), 0.0)
    # conv5: ConvTranspose (phase-decomposed) on cat(a4, em2) + folded BN + ReLU
    a5 = jnp.maximum(conv(a4, p5_ref, g5x_ref) + conv(e2, p5_ref, g5e_ref)
                     + b5_ref[...], 0.0)
    # conv6: ConvTranspose (phase-decomposed) + folded BN, no ReLU
    a6 = conv(a5, p6_ref, g6_ref) + b6_ref[...]

    out_ref[0] = a6
    x2_ref[0] = a2
    x4_ref[0] = a4


# ----------------------------------------------------------------------------
# Constant-matrix builders (trace-time, tiny): P encodes vertical structure,
# G folds horizontal taps + channel mixing into one lane-space matrix.
# ----------------------------------------------------------------------------
def _p_conv(hi, ho, stride):
    # P[ky, i, a] = 1  iff  a == stride*i + ky - 1  (pad=1 handled by dropping)
    p = np.zeros((3, ho, hi), np.float32)
    for ky in range(3):
        for i in range(ho):
            a = stride * i + ky - 1
            if 0 <= a < hi:
                p[ky, i, a] = 1.0
    return jnp.asarray(p)


def _p_deconv(hi):
    # ConvTranspose2d(k=3, s=2, p=1, output_padding=1):  i = 2*a + ky - 1
    ho = 2 * hi
    p = np.zeros((3, ho, hi), np.float32)
    for ky in range(3):
        for a in range(hi):
            i = 2 * a + ky - 1
            if 0 <= i < ho:
                p[ky, i, a] = 1.0
    return jnp.asarray(p)


def _g_conv(w_hwio, wi, stride):
    # w_hwio: (3, 3, Cin, Cout)  ->  G: (3, Wi*Cin, Wo*Cout), Wo = Wi // stride
    wo = wi // stride
    _, _, cin, cout = w_hwio.shape
    s = np.zeros((3, wi, wo), np.float32)     # s[kx, b, j] = 1 iff b == s*j+kx-1
    for kx in range(3):
        for j in range(wo):
            b = stride * j + kx - 1
            if 0 <= b < wi:
                s[kx, b, j] = 1.0
    g = jnp.einsum('xbj,yxcd->ybcjd', jnp.asarray(s), w_hwio,
                   precision=lax.Precision.HIGHEST)
    return g.reshape(3, wi * cin, wo * cout)


def _g_deconv(w_t, wi):
    # w_t: ConvTranspose layout (Cin, Cout, 3, 3) -> G: (3, Wi*Cin, Wo*Cout)
    wo = 2 * wi
    cin, cout = w_t.shape[0], w_t.shape[1]
    s = np.zeros((3, wi, wo), np.float32)     # s[kx, b, j] = 1 iff j == 2*b+kx-1
    for kx in range(3):
        for b in range(wi):
            j = 2 * b + kx - 1
            if 0 <= j < wo:
                s[kx, b, j] = 1.0
    g = jnp.einsum('xbj,cdyx->ybcjd', jnp.asarray(s), w_t,
                   precision=lax.Precision.HIGHEST)
    return g.reshape(3, wi * cin, wo * cout)


# ----------------------------------------------------------------------------
# Deterministic synthetic parameters (shapes follow hourglass_1.__init__)
# ----------------------------------------------------------------------------
def init_params(key, c):
    ks = jax.random.split(key, 10)

    def w(k, shape, fan_in):
        return jax.random.normal(k, shape, jnp.float32) * (2.0 / fan_in) ** 0.5 * 0.5

    p = {}
    p["conv1_w"] = w(ks[0], (3, 3, c, c), 9 * c)                    # HWIO
    p["conv2_w"] = w(ks[1], (3, 3, c, c), 9 * c)
    p["conv3_w"] = w(ks[2], (3, 3, 2 * c, 2 * c), 9 * 2 * c)
    p["conv4_w"] = w(ks[3], (3, 3, 2 * c, 2 * c), 9 * 2 * c)
    p["conv5_w"] = w(ks[4], (4 * c, 2 * c, 3, 3), 9 * 4 * c)        # ConvTranspose layout
    p["conv6_w"] = w(ks[5], (2 * c, c, 3, 3), 9 * 2 * c)
    # BatchNorm2d params (inference mode, folded into the deconv weights).
    p["bn5_gamma"] = 1.0 + 0.1 * jax.random.normal(ks[6], (2 * c,), jnp.float32)
    p["bn5_beta"] = 0.1 * jax.random.normal(ks[7], (2 * c,), jnp.float32)
    p["bn5_mean"] = jnp.zeros((2 * c,), jnp.float32)
    p["bn5_var"] = jnp.ones((2 * c,), jnp.float32)
    p["bn6_gamma"] = 1.0 + 0.1 * jax.random.normal(ks[8], (c,), jnp.float32)
    p["bn6_beta"] = 0.1 * jax.random.normal(ks[9], (c,), jnp.float32)
    p["bn6_mean"] = jnp.zeros((c,), jnp.float32)
    p["bn6_var"] = jnp.ones((c,), jnp.float32)
    return p


# ----------------------------------------------------------------------------
# Forward pass: mirrors hourglass_1.forward(x, em1, em2), one fused kernel
# ----------------------------------------------------------------------------
def hourglass_1_forward(params, x_nchw, em1_nchw, em2_nchw, eps=1e-5):
    n, c, h, w = x_nchw.shape
    h2, w2, h4, w4 = h // 2, w // 2, h // 4, w // 4
    c2 = 2 * c

    # TODO(synk): BatchNorm reproduced in inference mode (running stats), not
    # PyTorch's default training-mode batch statistics.
    s5 = params["bn5_gamma"] / jnp.sqrt(params["bn5_var"] + eps)
    w5 = params["conv5_w"] * s5[None, :, None, None]
    b5 = params["bn5_beta"] - params["bn5_mean"] * s5
    s6 = params["bn6_gamma"] / jnp.sqrt(params["bn6_var"] + eps)
    w6 = params["conv6_w"] * s6[None, :, None, None]
    b6 = params["bn6_beta"] - params["bn6_mean"] * s6

    # Constant P / G operands (tiny).
    p1 = _p_conv(h, h2, 2)
    g1 = _g_conv(params["conv1_w"], w, 2)
    p2 = _p_conv(h2, h2, 1)
    g2 = _g_conv(params["conv2_w"], w2, 1)
    p3 = _p_conv(h2, h4, 2)
    g3x = _g_conv(params["conv3_w"][:, :, :c, :], w2, 2)     # cat order: (x, em1)
    g3e = _g_conv(params["conv3_w"][:, :, c:, :], w2, 2)
    p4 = _p_conv(h4, h4, 1)
    g4 = _g_conv(params["conv4_w"], w4, 1)
    p5 = _p_deconv(h4)
    g5x = _g_deconv(w5[:c2], w4)                             # cat order: (x', em2)
    g5e = _g_deconv(w5[c2:], w4)
    b5row = jnp.tile(b5, w2).reshape(1, w2 * c2)
    p6 = _p_deconv(h2)
    g6 = _g_deconv(w6, w2)
    b6row = jnp.tile(b6, w).reshape(1, w * c)

    # Merged (N, H, W*C) activation layout for the kernel.
    x_m = jnp.transpose(x_nchw, (0, 2, 3, 1)).reshape(n, h, w * c)
    em1_m = jnp.transpose(em1_nchw, (0, 2, 3, 1)).reshape(n, h2, w2 * c)
    em2_m = jnp.transpose(em2_nchw, (0, 2, 3, 1)).reshape(n, h4, w4 * c2)

    consts = [p1, g1, p2, g2, p3, g3x, g3e, p4, g4,
              p5, g5x, g5e, b5row, p6, g6, b6row]

    def batch_spec(rows, lanes):
        return pl.BlockSpec((1, rows, lanes), lambda i: (i, 0, 0))

    def const_spec(arr):
        zero = (0,) * arr.ndim
        return pl.BlockSpec(arr.shape, lambda i, zero=zero: zero)

    in_specs = ([batch_spec(h, w * c),
                 batch_spec(h2, w2 * c),
                 batch_spec(h4, w4 * c2)]
                + [const_spec(a) for a in consts])
    out_specs = [batch_spec(h, w * c),
                 batch_spec(h2, w2 * c),
                 batch_spec(h4, w4 * c2)]
    out_shapes = (jax.ShapeDtypeStruct((n, h, w * c), jnp.float32),    # conv6 out
                  jax.ShapeDtypeStruct((n, h2, w2 * c), jnp.float32),  # conv2+relu
                  jax.ShapeDtypeStruct((n, h4, w4 * c2), jnp.float32)) # conv4+relu

    out_m, x2_m, x4_m = pl.pallas_call(
        _hourglass_kernel,
        out_shape=out_shapes,
        grid_spec=pltpu.PrefetchScalarGridSpec(
            num_scalar_prefetch=0,
            grid=(n,),
            in_specs=in_specs,
            out_specs=out_specs,
        ),
        compiler_params=pltpu.CompilerParams(dimension_semantics=("parallel",)),
    )(x_m, em1_m, em2_m, *consts)

    # Back to NCHW + the two channel-concats that form the returned x / x_prime.
    out = jnp.transpose(out_m.reshape(n, h, w, c), (0, 3, 1, 2))
    x2 = jnp.transpose(x2_m.reshape(n, h2, w2, c), (0, 3, 1, 2))
    x4 = jnp.transpose(x4_m.reshape(n, h4, w4, c2), (0, 3, 1, 2))
    x_cat = jnp.concatenate([x2, em1_nchw], axis=1)
    xp_cat = jnp.concatenate([x4, em2_nchw], axis=1)
    return out, x_cat, xp_cat


# ----------------------------------------------------------------------------
# Pure-JAX/XLA reference of the same forward pass (for in-script validation)
# ----------------------------------------------------------------------------
def _ref_forward(params, x_nchw, em1_nchw, em2_nchw, eps=1e-5):
    dn = ('NHWC', 'HWIO', 'NHWC')
    hp = lax.Precision.HIGHEST
    to_nhwc = lambda t: jnp.transpose(t, (0, 2, 3, 1))
    to_nchw = lambda t: jnp.transpose(t, (0, 3, 1, 2))

    def conv(x, wk, stride):
        return lax.conv_general_dilated(x, wk, (stride, stride),
                                        [(1, 1), (1, 1)],
                                        dimension_numbers=dn, precision=hp)

    def deconv(x, w_t):
        w_conv = jnp.transpose(w_t[:, :, ::-1, ::-1], (2, 3, 0, 1))
        return lax.conv_general_dilated(x, w_conv, (1, 1), [(1, 2), (1, 2)],
                                        lhs_dilation=(2, 2),
                                        dimension_numbers=dn, precision=hp)

    x = to_nhwc(x_nchw); em1 = to_nhwc(em1_nchw); em2 = to_nhwc(em2_nchw)
    x = jax.nn.relu(conv(x, params["conv1_w"], 2))
    x = jax.nn.relu(conv(x, params["conv2_w"], 1))
    xc = jnp.concatenate([x, em1], axis=-1)
    xp = jax.nn.relu(conv(xc, params["conv3_w"], 2))
    xp = jax.nn.relu(conv(xp, params["conv4_w"], 1))
    xpc = jnp.concatenate([xp, em2], axis=-1)
    s5 = params["bn5_gamma"] / jnp.sqrt(params["bn5_var"] + eps)
    w5 = params["conv5_w"] * s5[None, :, None, None]
    b5 = params["bn5_beta"] - params["bn5_mean"] * s5
    out = jax.nn.relu(deconv(xpc, w5) + b5)
    s6 = params["bn6_gamma"] / jnp.sqrt(params["bn6_var"] + eps)
    w6 = params["conv6_w"] * s6[None, :, None, None]
    b6 = params["bn6_beta"] - params["bn6_mean"] * s6
    out = deconv(out, w6) + b6
    return to_nchw(out), to_nchw(xc), to_nchw(xpc)


if __name__ == "__main__":
    key = jax.random.PRNGKey(0)
    n, c, h, w = 2, 4, 16, 16
    kx, ke1, ke2, kp = jax.random.split(key, 4)
    x = jax.random.normal(kx, (n, c, h, w), jnp.float32)
    em1 = jax.random.normal(ke1, (n, c, h // 2, w // 2), jnp.float32)
    em2 = jax.random.normal(ke2, (n, 2 * c, h // 4, w // 4), jnp.float32)
    params = init_params(kp, c)

    fwd = jax.jit(hourglass_1_forward)
    out, x_cat, xp_cat = fwd(params, x, em1, em2)
    jax.block_until_ready((out, x_cat, xp_cat))

    assert out.shape == (n, c, h, w)
    assert x_cat.shape == (n, 2 * c, h // 2, w // 2)
    assert xp_cat.shape == (n, 4 * c, h // 4, w // 4)

    # Cross-check against the pure-JAX reference (loose tol for matmul-unit
    # precision differences; catches any structural/indexing error).
    ref_out, ref_xc, ref_xpc = jax.jit(_ref_forward)(params, x, em1, em2)
    np.testing.assert_allclose(np.asarray(out), np.asarray(ref_out),
                               rtol=2e-2, atol=2e-2)
    np.testing.assert_allclose(np.asarray(x_cat), np.asarray(ref_xc),
                               rtol=2e-2, atol=2e-2)
    np.testing.assert_allclose(np.asarray(xp_cat), np.asarray(ref_xpc),
                               rtol=2e-2, atol=2e-2)

    print("KERNEL_OK")
</pallas_src>

<mosaic_0001>
module attributes {stable_mosaic.version = 11 : i64} {
  func.func @_hourglass_kernel(%arg0: i32, %arg1: memref<1x16x64xf32, #tpu.memory_space<vmem>>, %arg2: memref<1x8x32xf32, #tpu.memory_space<vmem>>, %arg3: memref<1x4x32xf32, #tpu.memory_space<vmem>>, %arg4: memref<3x8x16xf32, #tpu.memory_space<vmem>>, %arg5: memref<3x64x32xf32, #tpu.memory_space<vmem>>, %arg6: memref<3x8x8xf32, #tpu.memory_space<vmem>>, %arg7: memref<3x32x32xf32, #tpu.memory_space<vmem>>, %arg8: memref<3x4x8xf32, #tpu.memory_space<vmem>>, %arg9: memref<3x32x32xf32, #tpu.memory_space<vmem>>, %arg10: memref<3x32x32xf32, #tpu.memory_space<vmem>>, %arg11: memref<3x4x4xf32, #tpu.memory_space<vmem>>, %arg12: memref<3x32x32xf32, #tpu.memory_space<vmem>>, %arg13: memref<3x8x4xf32, #tpu.memory_space<vmem>>, %arg14: memref<3x32x64xf32, #tpu.memory_space<vmem>>, %arg15: memref<3x32x64xf32, #tpu.memory_space<vmem>>, %arg16: memref<1x64xf32, #tpu.memory_space<vmem>>, %arg17: memref<3x16x8xf32, #tpu.memory_space<vmem>>, %arg18: memref<3x64x64xf32, #tpu.memory_space<vmem>>, %arg19: memref<1x64xf32, #tpu.memory_space<vmem>>, %arg20: memref<1x16x64xf32, #tpu.memory_space<vmem>>, %arg21: memref<1x8x32xf32, #tpu.memory_space<vmem>>, %arg22: memref<1x4x32xf32, #tpu.memory_space<vmem>>) attributes {dimension_semantics = [#tpu.dimension_semantics<parallel>], iteration_bounds = array<i64: 2>, scalar_prefetch = 0 : i64, scratch_operands = 0 : i64, tpu.core_type = #tpu.core_type<tc>, window_params = [{transform_indices = @transform_0, window_bounds = array<i64: 1, 16, 64>}, {transform_indices = @transform_1, window_bounds = array<i64: 1, 8, 32>}, {transform_indices = @transform_2, window_bounds = array<i64: 1, 4, 32>}, {pipeline_mode = #tpu.pipeline_mode<synchronous>, transform_indices = @transform_3, window_bounds = array<i64: 3, 8, 16>}, {pipeline_mode = #tpu.pipeline_mode<synchronous>, transform_indices = @transform_4, window_bounds = array<i64: 3, 64, 32>}, {pipeline_mode = #tpu.pipeline_mode<synchronous>, transform_indices = @transform_5, window_bounds = array<i64: 3, 8, 8>}, {pipeline_mode = #tpu.pipeline_mode<synchronous>, transform_indices = @transform_6, window_bounds = array<i64: 3, 32, 32>}, {pipeline_mode = #tpu.pipeline_mode<synchronous>, transform_indices = @transform_7, window_bounds = array<i64: 3, 4, 8>}, {pipeline_mode = #tpu.pipeline_mode<synchronous>, transform_indices = @transform_8, window_bounds = array<i64: 3, 32, 32>}, {pipeline_mode = #tpu.pipeline_mode<synchronous>, transform_indices = @transform_9, window_bounds = array<i64: 3, 32, 32>}, {pipeline_mode = #tpu.pipeline_mode<synchronous>, transform_indices = @transform_10, window_bounds = array<i64: 3, 4, 4>}, {pipeline_mode = #tpu.pipeline_mode<synchronous>, transform_indices = @transform_11, window_bounds = array<i64: 3, 32, 32>}, {pipeline_mode = #tpu.pipeline_mode<synchronous>, transform_indices = @transform_12, window_bounds = array<i64: 3, 8, 4>}, {pipeline_mode = #tpu.pipeline_mode<synchronous>, transform_indices = @transform_13, window_bounds = array<i64: 3, 32, 64>}, {pipeline_mode = #tpu.pipeline_mode<synchronous>, transform_indices = @transform_14, window_bounds = array<i64: 3, 32, 64>}, {pipeline_mode = #tpu.pipeline_mode<synchronous>, transform_indices = @transform_15, window_bounds = array<i64: 1, 64>}, {pipeline_mode = #tpu.pipeline_mode<synchronous>, transform_indices = @transform_16, window_bounds = array<i64: 3, 16, 8>}, {pipeline_mode = #tpu.pipeline_mode<synchronous>, transform_indices = @transform_17, window_bounds = array<i64: 3, 64, 64>}, {pipeline_mode = #tpu.pipeline_mode<synchronous>, transform_indices = @transform_18, window_bounds = array<i64: 1, 64>}, {transform_indices = @transform_19, window_bounds = array<i64: 1, 16, 64>}, {transform_indices = @transform_20, window_bounds = array<i64: 1, 8, 32>}, {transform_indices = @transform_21, window_bounds = array<i64: 1, 4, 32>}]} {
    %c0 = arith.constant 0 : index
    %c0_0 = arith.constant 0 : index
    %c0_1 = arith.constant 0 : index
    %0 = vector.load %arg1[%c0, %c0_0, %c0_1] : memref<1x16x64xf32, #tpu.memory_space<vmem>>, vector<1x16x64xf32>
    %1 = vector.shape_cast %0 : vector<1x16x64xf32> to vector<16x64xf32>
    %c0_2 = arith.constant 0 : index
    %c0_3 = arith.constant 0 : index
    %c0_4 = arith.constant 0 : index
    %2 = vector.load %arg2[%c0_2, %c0_3, %c0_4] : memref<1x8x32xf32, #tpu.memory_space<vmem>>, vector<1x8x32xf32>
    %3 = vector.shape_cast %2 : vector<1x8x32xf32> to vector<8x32xf32>
    %c0_5 = arith.constant 0 : index
    %c0_6 = arith.constant 0 : index
    %c0_7 = arith.constant 0 : index
    %4 = vector.load %arg3[%c0_5, %c0_6, %c0_7] : memref<1x4x32xf32, #tpu.memory_space<vmem>>, vector<1x4x32xf32>
    %5 = vector.shape_cast %4 : vector<1x4x32xf32> to vector<4x32xf32>
    %c0_8 = arith.constant 0 : index
    %c0_9 = arith.constant 0 : index
    %c0_10 = arith.constant 0 : index
    %6 = vector.load %arg5[%c0_8, %c0_9, %c0_10] : memref<3x64x32xf32, #tpu.memory_space<vmem>>, vector<1x64x32xf32>
    %7 = vector.shape_cast %6 : vector<1x64x32xf32> to vector<64x32xf32>
    %cst = arith.constant dense<0.000000e+00> : vector<16x32xf32>
    %8 = tpu.matmul %1, %7, %cst {dimension_numbers = #tpu.dot_dimension_numbers<[1], [0], [0], [1], [0, 0, 1, 1], [], []>} : vector<16x64xf32>, vector<64x32xf32>, vector<16x32xf32> -> vector<16x32xf32>
    %c0_11 = arith.constant 0 : index
    %c0_12 = arith.constant 0 : index
    %c0_13 = arith.constant 0 : index
    %9 = vector.load %arg4[%c0_11, %c0_12, %c0_13] : memref<3x8x16xf32, #tpu.memory_space<vmem>>, vector<1x8x16xf32>
    %10 = vector.shape_cast %9 : vector<1x8x16xf32> to vector<8x16xf32>
    %cst_14 = arith.constant dense<0.000000e+00> : vector<8x32xf32>
    %11 = tpu.matmul %10, %8, %cst_14 {dimension_numbers = #tpu.dot_dimension_numbers<[1], [0], [0], [1], [0, 0, 1, 1], [], []>} : vector<8x16xf32>, vector<16x32xf32>, vector<8x32xf32> -> vector<8x32xf32>
    %c1 = arith.constant 1 : index
    %c0_15 = arith.constant 0 : index
    %c0_16 = arith.constant 0 : index
    %12 = vector.load %arg5[%c1, %c0_15, %c0_16] : memref<3x64x32xf32, #tpu.memory_space<vmem>>, vector<1x64x32xf32>
    %13 = vector.shape_cast %12 : vector<1x64x32xf32> to vector<64x32xf32>
    %cst_17 = arith.constant dense<0.000000e+00> : vector<16x32xf32>
    %14 = tpu.matmul %1, %13, %cst_17 {dimension_numbers = #tpu.dot_dimension_numbers<[1], [0], [0], [1], [0, 0, 1, 1], [], []>} : vector<16x64xf32>, vector<64x32xf32>, vector<16x32xf32> -> vector<16x32xf32>
    %c1_18 = arith.constant 1 : index
    %c0_19 = arith.constant 0 : index
    %c0_20 = arith.constant 0 : index
    %15 = vector.load %arg4[%c1_18, %c0_19, %c0_20] : memref<3x8x16xf32, #tpu.memory_space<vmem>>, vector<1x8x16xf32>
    %16 = vector.shape_cast %15 : vector<1x8x16xf32> to vector<8x16xf32>
    %cst_21 = arith.constant dense<0.000000e+00> : vector<8x32xf32>
    %17 = tpu.matmul %16, %14, %cst_21 {dimension_numbers = #tpu.dot_dimension_numbers<[1], [0], [0], [1], [0, 0, 1, 1], [], []>} : vector<8x16xf32>, vector<16x32xf32>, vector<8x32xf32> -> vector<8x32xf32>
    %18 = arith.addf %11, %17 : vector<8x32xf32>
    %c2 = arith.constant 2 : index
    %c0_22 = arith.constant 0 : index
    %c0_23 = arith.constant 0 : index
    %19 = vector.load %arg5[%c2, %c0_22, %c0_23] : memref<3x64x32xf32, #tpu.memory_space<vmem>>, vector<1x64x32xf32>
    %20 = vector.shape_cast %19 : vector<1x64x32xf32> to vector<64x32xf32>
    %cst_24 = arith.constant dense<0.000000e+00> : vector<16x32xf32>
    %21 = tpu.matmul %1, %20, %cst_24 {dimension_numbers = #tpu.dot_dimension_numbers<[1], [0], [0], [1], [0, 0, 1, 1], [], []>} : vector<16x64xf32>, vector<64x32xf32>, vector<16x32xf32> -> vector<16x32xf32>
    %c2_25 = arith.constant 2 : index
    %c0_26 = arith.constant 0 : index
    %c0_27 = arith.constant 0 : index
    %22 = vector.load %arg4[%c2_25, %c0_26, %c0_27] : memref<3x8x16xf32, #tpu.memory_space<vmem>>, vector<1x8x16xf32>
    %23 = vector.shape_cast %22 : vector<1x8x16xf32> to vector<8x16xf32>
    %cst_28 = arith.constant dense<0.000000e+00> : vector<8x32xf32>
    %24 = tpu.matmul %23, %21, %cst_28 {dimension_numbers = #tpu.dot_dimension_numbers<[1], [0], [0], [1], [0, 0, 1, 1], [], []>} : vector<8x16xf32>, vector<16x32xf32>, vector<8x32xf32> -> vector<8x32xf32>
    %25 = arith.addf %18, %24 : vector<8x32xf32>
    %cst_29 = arith.constant 0.000000e+00 : f32
    %26 = vector.broadcast %cst_29 : f32 to vector<8x32xf32>
    %27 = arith.maximumf %25, %26 : vector<8x32xf32>
    %c0_30 = arith.constant 0 : index
    %c0_31 = arith.constant 0 : index
    %c0_32 = arith.constant 0 : index
    %28 = vector.load %arg7[%c0_30, %c0_31, %c0_32] : memref<3x32x32xf32, #tpu.memory_space<vmem>>, vector<1x32x32xf32>
    %29 = vector.shape_cast %28 : vector<1x32x32xf32> to vector<32x32xf32>
    %cst_33 = arith.constant dense<0.000000e+00> : vector<8x32xf32>
    %30 = tpu.matmul %27, %29, %cst_33 {dimension_numbers = #tpu.dot_dimension_numbers<[1], [0], [0], [1], [0, 0, 1, 1], [], []>} : vector<8x32xf32>, vector<32x32xf32>, vector<8x32xf32> -> vector<8x32xf32>
    %c0_34 = arith.constant 0 : index
    %c0_35 = arith.constant 0 : index
    %c0_36 = arith.constant 0 : index
    %31 = vector.load %arg6[%c0_34, %c0_35, %c0_36] : memref<3x8x8xf32, #tpu.memory_space<vmem>>, vector<1x8x8xf32>
    %32 = vector.shape_cast %31 : vector<1x8x8xf32> to vector<8x8xf32>
    %cst_37 = arith.constant dense<0.000000e+00> : vector<8x32xf32>
    %33 = tpu.matmul %32, %30, %cst_37 {dimension_numbers = #tpu.dot_dimension_numbers<[1], [0], [0], [1], [0, 0, 1, 1], [], []>} : vector<8x8xf32>, vector<8x32xf32>, vector<8x32xf32> -> vector<8x32xf32>
    %c1_38 = arith.constant 1 : index
    %c0_39 = arith.constant 0 : index
    %c0_40 = arith.constant 0 : index
    %34 = vector.load %arg7[%c1_38, %c0_39, %c0_40] : memref<3x32x32xf32, #tpu.memory_space<vmem>>, vector<1x32x32xf32>
    %35 = vector.shape_cast %34 : vector<1x32x32xf32> to vector<32x32xf32>
    %cst_41 = arith.constant dense<0.000000e+00> : vector<8x32xf32>
    %36 = tpu.matmul %27, %35, %cst_41 {dimension_numbers = #tpu.dot_dimension_numbers<[1], [0], [0], [1], [0, 0, 1, 1], [], []>} : vector<8x32xf32>, vector<32x32xf32>, vector<8x32xf32> -> vector<8x32xf32>
    %c1_42 = arith.constant 1 : index
    %c0_43 = arith.constant 0 : index
    %c0_44 = arith.constant 0 : index
    %37 = vector.load %arg6[%c1_42, %c0_43, %c0_44] : memref<3x8x8xf32, #tpu.memory_space<vmem>>, vector<1x8x8xf32>
    %38 = vector.shape_cast %37 : vector<1x8x8xf32> to vector<8x8xf32>
    %cst_45 = arith.constant dense<0.000000e+00> : vector<8x32xf32>
    %39 = tpu.matmul %38, %36, %cst_45 {dimension_numbers = #tpu.dot_dimension_numbers<[1], [0], [0], [1], [0, 0, 1, 1], [], []>} : vector<8x8xf32>, vector<8x32xf32>, vector<8x32xf32> -> vector<8x32xf32>
    %40 = arith.addf %33, %39 : vector<8x32xf32>
    %c2_46 = arith.constant 2 : index
    %c0_47 = arith.constant 0 : index
    %c0_48 = arith.constant 0 : index
    %41 = vector.load %arg7[%c2_46, %c0_47, %c0_48] : memref<3x32x32xf32, #tpu.memory_space<vmem>>, vector<1x32x32xf32>
    %42 = vector.shape_cast %41 : vector<1x32x32xf32> to vector<32x32xf32>
    %cst_49 = arith.constant dense<0.000000e+00> : vector<8x32xf32>
    %43 = tpu.matmul %27, %42, %cst_49 {dimension_numbers = #tpu.dot_dimension_numbers<[1], [0], [0], [1], [0, 0, 1, 1], [], []>} : vector<8x32xf32>, vector<32x32xf32>, vector<8x32xf32> -> vector<8x32xf32>
    %c2_50 = arith.constant 2 : index
    %c0_51 = arith.constant 0 : index
    %c0_52 = arith.constant 0 : index
    %44 = vector.load %arg6[%c2_50, %c0_51, %c0_52] : memref<3x8x8xf32, #tpu.memory_space<vmem>>, vector<1x8x8xf32>
    %45 = vector.shape_cast %44 : vector<1x8x8xf32> to vector<8x8xf32>
    %cst_53 = arith.constant dense<0.000000e+00> : vector<8x32xf32>
    %46 = tpu.matmul %45, %43, %cst_53 {dimension_numbers = #tpu.dot_dimension_numbers<[1], [0], [0], [1], [0, 0, 1, 1], [], []>} : vector<8x8xf32>, vector<8x32xf32>, vector<8x32xf32> -> vector<8x32xf32>
    %47 = arith.addf %40, %46 : vector<8x32xf32>
    %cst_54 = arith.constant 0.000000e+00 : f32
    %48 = vector.broadcast %cst_54 : f32 to vector<8x32xf32>
    %49 = arith.maximumf %47, %48 : vector<8x32xf32>
    %c0_55 = arith.constant 0 : index
    %c0_56 = arith.constant 0 : index
    %c0_57 = arith.constant 0 : index
    %50 = vector.load %arg9[%c0_55, %c0_56, %c0_57] : memref<3x32x32xf32, #tpu.memory_space<vmem>>, vector<1x32x32xf32>
    %51 = vector.shape_cast %50 : vector<1x32x32xf32> to vector<32x32xf32>
    %cst_58 = arith.constant dense<0.000000e+00> : vector<8x32xf32>
    %52 = tpu.matmul %49, %51, %cst_58 {dimension_numbers = #tpu.dot_dimension_numbers<[1], [0], [0], [1], [0, 0, 1, 1], [], []>} : vector<8x32xf32>, vector<32x32xf32>, vector<8x32xf32> -> vector<8x32xf32>
    %c0_59 = arith.constant 0 : index
    %c0_60 = arith.constant 0 : index
    %c0_61 = arith.constant 0 : index
    %53 = vector.load %arg8[%c0_59, %c0_60, %c0_61] : memref<3x4x8xf32, #tpu.memory_space<vmem>>, vector<1x4x8xf32>
    %54 = vector.shape_cast %53 : vector<1x4x8xf32> to vector<4x8xf32>
    %cst_62 = arith.constant dense<0.000000e+00> : vector<4x32xf32>
    %55 = tpu.matmul %54, %52, %cst_62 {dimension_numbers = #tpu.dot_dimension_numbers<[1], [0], [0], [1], [0, 0, 1, 1], [], []>} : vector<4x8xf32>, vector<8x32xf32>, vector<4x32xf32> -> vector<4x32xf32>
    %c1_63 = arith.constant 1 : index
    %c0_64 = arith.constant 0 : index
    %c0_65 = arith.constant 0 : index
    %56 = vector.load %arg9[%c1_63, %c0_64, %c0_65] : memref<3x32x32xf32, #tpu.memory_space<vmem>>, vector<1x32x32xf32>
    %57 = vector.shape_cast %56 : vector<1x32x32xf32> to vector<32x32xf32>
    %cst_66 = arith.constant dense<0.000000e+00> : vector<8x32xf32>
    %58 = tpu.matmul %49, %57, %cst_66 {dimension_numbers = #tpu.dot_dimension_numbers<[1], [0], [0], [1], [0, 0, 1, 1], [], []>} : vector<8x32xf32>, vector<32x32xf32>, vector<8x32xf32> -> vector<8x32xf32>
    %c1_67 = arith.constant 1 : index
    %c0_68 = arith.constant 0 : index
    %c0_69 = arith.constant 0 : index
    %59 = vector.load %arg8[%c1_67, %c0_68, %c0_69] : memref<3x4x8xf32, #tpu.memory_space<vmem>>, vector<1x4x8xf32>
    %60 = vector.shape_cast %59 : vector<1x4x8xf32> to vector<4x8xf32>
    %cst_70 = arith.constant dense<0.000000e+00> : vector<4x32xf32>
    %61 = tpu.matmul %60, %58, %cst_70 {dimension_numbers = #tpu.dot_dimension_numbers<[1], [0], [0], [1], [0, 0, 1, 1], [], []>} : vector<4x8xf32>, vector<8x32xf32>, vector<4x32xf32> -> vector<4x32xf32>
    %62 = arith.addf %55, %61 : vector<4x32xf32>
    %c2_71 = arith.constant 2 : index
    %c0_72 = arith.constant 0 : index
    %c0_73 = arith.constant 0 : index
    %63 = vector.load %arg9[%c2_71, %c0_72, %c0_73] : memref<3x32x32xf32, #tpu.memory_space<vmem>>, vector<1x32x32xf32>
    %64 = vector.shape_cast %63 : vector<1x32x32xf32> to vector<32x32xf32>
    %cst_74 = arith.constant dense<0.000000e+00> : vector<8x32xf32>
    %65 = tpu.matmul %49, %64, %cst_74 {dimension_numbers = #tpu.dot_dimension_numbers<[1], [0], [0], [1], [0, 0, 1, 1], [], []>} : vector<8x32xf32>, vector<32x32xf32>, vector<8x32xf32> -> vector<8x32xf32>
    %c2_75 = arith.constant 2 : index
    %c0_76 = arith.constant 0 : index
    %c0_77 = arith.constant 0 : index
    %66 = vector.load %arg8[%c2_75, %c0_76, %c0_77] : memref<3x4x8xf32, #tpu.memory_space<vmem>>, vector<1x4x8xf32>
    %67 = vector.shape_cast %66 : vector<1x4x8xf32> to vector<4x8xf32>
    %cst_78 = arith.constant dense<0.000000e+00> : vector<4x32xf32>
    %68 = tpu.matmul %67, %65, %cst_78 {dimension_numbers = #tpu.dot_dimension_numbers<[1], [0], [0], [1], [0, 0, 1, 1], [], []>} : vector<4x8xf32>, vector<8x32xf32>, vector<4x32xf32> -> vector<4x32xf32>
    %69 = arith.addf %62, %68 : vector<4x32xf32>
    %c0_79 = arith.constant 0 : index
    %c0_80 = arith.constant 0 : index
    %c0_81 = arith.constant 0 : index
    %70 = vector.load %arg10[%c0_79, %c0_80, %c0_81] : memref<3x32x32xf32, #tpu.memory_space<vmem>>, vector<1x32x32xf32>
    %71 = vector.shape_cast %70 : vector<1x32x32xf32> to vector<32x32xf32>
    %cst_82 = arith.constant dense<0.000000e+00> : vector<8x32xf32>
    %72 = tpu.matmul %3, %71, %cst_82 {dimension_numbers = #tpu.dot_dimension_numbers<[1], [0], [0], [1], [0, 0, 1, 1], [], []>} : vector<8x32xf32>, vector<32x32xf32>, vector<8x32xf32> -> vector<8x32xf32>
    %c0_83 = arith.constant 0 : index
    %c0_84 = arith.constant 0 : index
    %c0_85 = arith.constant 0 : index
    %73 = vector.load %arg8[%c0_83, %c0_84, %c0_85] : memref<3x4x8xf32, #tpu.memory_space<vmem>>, vector<1x4x8xf32>
    %74 = vector.shape_cast %73 : vector<1x4x8xf32> to vector<4x8xf32>
    %cst_86 = arith.constant dense<0.000000e+00> : vector<4x32xf32>
    %75 = tpu.matmul %74, %72, %cst_86 {dimension_numbers = #tpu.dot_dimension_numbers<[1], [0], [0], [1], [0, 0, 1, 1], [], []>} : vector<4x8xf32>, vector<8x32xf32>, vector<4x32xf32> -> vector<4x32xf32>
    %c1_87 = arith.constant 1 : index
    %c0_88 = arith.constant 0 : index
    %c0_89 = arith.constant 0 : index
    %76 = vector.load %arg10[%c1_87, %c0_88, %c0_89] : memref<3x32x32xf32, #tpu.memory_space<vmem>>, vector<1x32x32xf32>
    %77 = vector.shape_cast %76 : vector<1x32x32xf32> to vector<32x32xf32>
    %cst_90 = arith.constant dense<0.000000e+00> : vector<8x32xf32>
    %78 = tpu.matmul %3, %77, %cst_90 {dimension_numbers = #tpu.dot_dimension_numbers<[1], [0], [0], [1], [0, 0, 1, 1], [], []>} : vector<8x32xf32>, vector<32x32xf32>, vector<8x32xf32> -> vector<8x32xf32>
    %c1_91 = arith.constant 1 : index
    %c0_92 = arith.constant 0 : index
    %c0_93 = arith.constant 0 : index
    %79 = vector.load %arg8[%c1_91, %c0_92, %c0_93] : memref<3x4x8xf32, #tpu.memory_space<vmem>>, vector<1x4x8xf32>
    %80 = vector.shape_cast %79 : vector<1x4x8xf32> to vector<4x8xf32>
    %cst_94 = arith.constant dense<0.000000e+00> : vector<4x32xf32>
    %81 = tpu.matmul %80, %78, %cst_94 {dimension_numbers = #tpu.dot_dimension_numbers<[1], [0], [0], [1], [0, 0, 1, 1], [], []>} : vector<4x8xf32>, vector<8x32xf32>, vector<4x32xf32> -> vector<4x32xf32>
    %82 = arith.addf %75, %81 : vector<4x32xf32>
    %c2_95 = arith.constant 2 : index
    %c0_96 = arith.constant 0 : index
    %c0_97 = arith.constant 0 : index
    %83 = vector.load %arg10[%c2_95, %c0_96, %c0_97] : memref<3x32x32xf32, #tpu.memory_space<vmem>>, vector<1x32x32xf32>
    %84 = vector.shape_cast %83 : vector<1x32x32xf32> to vector<32x32xf32>
    %cst_98 = arith.constant dense<0.000000e+00> : vector<8x32xf32>
    %85 = tpu.matmul %3, %84, %cst_98 {dimension_numbers = #tpu.dot_dimension_numbers<[1], [0], [0], [1], [0, 0, 1, 1], [], []>} : vector<8x32xf32>, vector<32x32xf32>, vector<8x32xf32> -> vector<8x32xf32>
    %c2_99 = arith.constant 2 : index
    %c0_100 = arith.constant 0 : index
    %c0_101 = arith.constant 0 : index
    %86 = vector.load %arg8[%c2_99, %c0_100, %c0_101] : memref<3x4x8xf32, #tpu.memory_space<vmem>>, vector<1x4x8xf32>
    %87 = vector.shape_cast %86 : vector<1x4x8xf32> to vector<4x8xf32>
    %cst_102 = arith.constant dense<0.000000e+00> : vector<4x32xf32>
    %88 = tpu.matmul %87, %85, %cst_102 {dimension_numbers = #tpu.dot_dimension_numbers<[1], [0], [0], [1], [0, 0, 1, 1], [], []>} : vector<4x8xf32>, vector<8x32xf32>, vector<4x32xf32> -> vector<4x32xf32>
    %89 = arith.addf %82, %88 : vector<4x32xf32>
    %90 = arith.addf %69, %89 : vector<4x32xf32>
    %cst_103 = arith.constant 0.000000e+00 : f32
    %91 = vector.broadcast %cst_103 : f32 to vector<4x32xf32>
    %92 = arith.maximumf %90, %91 : vector<4x32xf32>
    %c0_104 = arith.constant 0 : index
    %c0_105 = arith.constant 0 : index
    %c0_106 = arith.constant 0 : index
    %93 = vector.load %arg12[%c0_104, %c0_105, %c0_106] : memref<3x32x32xf32, #tpu.memory_space<vmem>>, vector<1x32x32xf32>
    %94 = vector.shape_cast %93 : vector<1x32x32xf32> to vector<32x32xf32>
    %cst_107 = arith.constant dense<0.000000e+00> : vector<4x32xf32>
    %95 = tpu.matmul %92, %94, %cst_107 {dimension_numbers = #tpu.dot_dimension_numbers<[1], [0], [0], [1], [0, 0, 1, 1], [], []>} : vector<4x32xf32>, vector<32x32xf32>, vector<4x32xf32> -> vector<4x32xf32>
    %c0_108 = arith.constant 0 : index
    %c0_109 = arith.constant 0 : index
    %c0_110 = arith.constant 0 : index
    %96 = vector.load %arg11[%c0_108, %c0_109, %c0_110] : memref<3x4x4xf32, #tpu.memory_space<vmem>>, vector<1x4x4xf32>
    %97 = vector.shape_cast %96 : vector<1x4x4xf32> to vector<4x4xf32>
    %cst_111 = arith.constant dense<0.000000e+00> : vector<4x32xf32>
    %98 = tpu.matmul %97, %95, %cst_111 {dimension_numbers = #tpu.dot_dimension_numbers<[1], [0], [0], [1], [0, 0, 1, 1], [], []>} : vector<4x4xf32>, vector<4x32xf32>, vector<4x32xf32> -> vector<4x32xf32>
    %c1_112 = arith.constant 1 : index
    %c0_113 = arith.constant 0 : index
    %c0_114 = arith.constant 0 : index
    %99 = vector.load %arg12[%c1_112, %c0_113, %c0_114] : memref<3x32x32xf32, #tpu.memory_space<vmem>>, vector<1x32x32xf32>
    %100 = vector.shape_cast %99 : vector<1x32x32xf32> to vector<32x32xf32>
    %cst_115 = arith.constant dense<0.000000e+00> : vector<4x32xf32>
    %101 = tpu.matmul %92, %100, %cst_115 {dimension_numbers = #tpu.dot_dimension_numbers<[1], [0], [0], [1], [0, 0, 1, 1], [], []>} : vector<4x32xf32>, vector<32x32xf32>, vector<4x32xf32> -> vector<4x32xf32>
    %c1_116 = arith.constant 1 : index
    %c0_117 = arith.constant 0 : index
    %c0_118 = arith.constant 0 : index
    %102 = vector.load %arg11[%c1_116, %c0_117, %c0_118] : memref<3x4x4xf32, #tpu.memory_space<vmem>>, vector<1x4x4xf32>
    %103 = vector.shape_cast %102 : vector<1x4x4xf32> to vector<4x4xf32>
    %cst_119 = arith.constant dense<0.000000e+00> : vector<4x32xf32>
    %104 = tpu.matmul %103, %101, %cst_119 {dimension_numbers = #tpu.dot_dimension_numbers<[1], [0], [0], [1], [0, 0, 1, 1], [], []>} : vector<4x4xf32>, vector<4x32xf32>, vector<4x32xf32> -> vector<4x32xf32>
    %105 = arith.addf %98, %104 : vector<4x32xf32>
    %c2_120 = arith.constant 2 : index
    %c0_121 = arith.constant 0 : index
    %c0_122 = arith.constant 0 : index
    %106 = vector.load %arg12[%c2_120, %c0_121, %c0_122] : memref<3x32x32xf32, #tpu.memory_space<vmem>>, vector<1x32x32xf32>
    %107 = vector.shape_cast %106 : vector<1x32x32xf32> to vector<32x32xf32>
    %cst_123 = arith.constant dense<0.000000e+00> : vector<4x32xf32>
    %108 = tpu.matmul %92, %107, %cst_123 {dimension_numbers = #tpu.dot_dimension_numbers<[1], [0], [0], [1], [0, 0, 1, 1], [], []>} : vector<4x32xf32>, vector<32x32xf32>, vector<4x32xf32> -> vector<4x32xf32>
    %c2_124 = arith.constant 2 : index
    %c0_125 = arith.constant 0 : index
    %c0_126 = arith.constant 0 : index
    %109 = vector.load %arg11[%c2_124, %c0_125, %c0_126] : memref<3x4x4xf32, #tpu.memory_space<vmem>>, vector<1x4x4xf32>
    %110 = vector.shape_cast %109 : vector<1x4x4xf32> to vector<4x4xf32>
    %cst_127 = arith.constant dense<0.000000e+00> : vector<4x32xf32>
    %111 = tpu.matmul %110, %108, %cst_127 {dimension_numbers = #tpu.dot_dimension_numbers<[1], [0], [0], [1], [0, 0, 1, 1], [], []>} : vector<4x4xf32>, vector<4x32xf32>, vector<4x32xf32> -> vector<4x32xf32>
    %112 = arith.addf %105, %111 : vector<4x32xf32>
    %cst_128 = arith.constant 0.000000e+00 : f32
    %113 = vector.broadcast %cst_128 : f32 to vector<4x32xf32>
    %114 = arith.maximumf %112, %113 : vector<4x32xf32>
    %c0_129 = arith.constant 0 : index
    %c0_130 = arith.constant 0 : index
    %c0_131 = arith.constant 0 : index
    %115 = vector.load %arg14[%c0_129, %c0_130, %c0_131] : memref<3x32x64xf32, #tpu.memory_space<vmem>>, vector<1x32x64xf32>
    %116 = vector.shape_cast %115 : vector<1x32x64xf32> to vector<32x64xf32>
    %cst_132 = arith.constant dense<0.000000e+00> : vector<4x64xf32>
    %117 = tpu.matmul %114, %116, %cst_132 {dimension_numbers = #tpu.dot_dimension_numbers<[1], [0], [0], [1], [0, 0, 1, 1], [], []>} : vector<4x32xf32>, vector<32x64xf32>, vector<4x64xf32> -> vector<4x64xf32>
    %c0_133 = arith.constant 0 : index
    %c0_134 = arith.constant 0 : index
    %c0_135 = arith.constant 0 : index
    %118 = vector.load %arg13[%c0_133, %c0_134, %c0_135] : memref<3x8x4xf32, #tpu.memory_space<vmem>>, vector<1x8x4xf32>
    %119 = vector.shape_cast %118 : vector<1x8x4xf32> to vector<8x4xf32>
    %cst_136 = arith.constant dense<0.000000e+00> : vector<8x64xf32>
    %120 = tpu.matmul %119, %117, %cst_136 {dimension_numbers = #tpu.dot_dimension_numbers<[1], [0], [0], [1], [0, 0, 1, 1], [], []>} : vector<8x4xf32>, vector<4x64xf32>, vector<8x64xf32> -> vector<8x64xf32>
    %c1_137 = arith.constant 1 : index
    %c0_138 = arith.constant 0 : index
    %c0_139 = arith.constant 0 : index
    %121 = vector.load %arg14[%c1_137, %c0_138, %c0_139] : memref<3x32x64xf32, #tpu.memory_space<vmem>>, vector<1x32x64xf32>
    %122 = vector.shape_cast %121 : vector<1x32x64xf32> to vector<32x64xf32>
    %cst_140 = arith.constant dense<0.000000e+00> : vector<4x64xf32>
    %123 = tpu.matmul %114, %122, %cst_140 {dimension_numbers = #tpu.dot_dimension_numbers<[1], [0], [0], [1], [0, 0, 1, 1], [], []>} : vector<4x32xf32>, vector<32x64xf32>, vector<4x64xf32> -> vector<4x64xf32>
    %c1_141 = arith.constant 1 : index
    %c0_142 = arith.constant 0 : index
    %c0_143 = arith.constant 0 : index
    %124 = vector.load %arg13[%c1_141, %c0_142, %c0_143] : memref<3x8x4xf32, #tpu.memory_space<vmem>>, vector<1x8x4xf32>
    %125 = vector.shape_cast %124 : vector<1x8x4xf32> to vector<8x4xf32>
    %cst_144 = arith.constant dense<0.000000e+00> : vector<8x64xf32>
    %126 = tpu.matmul %125, %123, %cst_144 {dimension_numbers = #tpu.dot_dimension_numbers<[1], [0], [0], [1], [0, 0, 1, 1], [], []>} : vector<8x4xf32>, vector<4x64xf32>, vector<8x64xf32> -> vector<8x64xf32>
    %127 = arith.addf %120, %126 : vector<8x64xf32>
    %c2_145 = arith.constant 2 : index
    %c0_146 = arith.constant 0 : index
    %c0_147 = arith.constant 0 : index
    %128 = vector.load %arg14[%c2_145, %c0_146, %c0_147] : memref<3x32x64xf32, #tpu.memory_space<vmem>>, vector<1x32x64xf32>
    %129 = vector.shape_cast %128 : vector<1x32x64xf32> to vector<32x64xf32>
    %cst_148 = arith.constant dense<0.000000e+00> : vector<4x64xf32>
    %130 = tpu.matmul %114, %129, %cst_148 {dimension_numbers = #tpu.dot_dimension_numbers<[1], [0], [0], [1], [0, 0, 1, 1], [], []>} : vector<4x32xf32>, vector<32x64xf32>, vector<4x64xf32> -> vector<4x64xf32>
    %c2_149 = arith.constant 2 : index
    %c0_150 = arith.constant 0 : index
    %c0_151 = arith.constant 0 : index
    %131 = vector.load %arg13[%c2_149, %c0_150, %c0_151] : memref<3x8x4xf32, #tpu.memory_space<vmem>>, vector<1x8x4xf32>
    %132 = vector.shape_cast %131 : vector<1x8x4xf32> to vector<8x4xf32>
    %cst_152 = arith.constant dense<0.000000e+00> : vector<8x64xf32>
    %133 = tpu.matmul %132, %130, %cst_152 {dimension_numbers = #tpu.dot_dimension_numbers<[1], [0], [0], [1], [0, 0, 1, 1], [], []>} : vector<8x4xf32>, vector<4x64xf32>, vector<8x64xf32> -> vector<8x64xf32>
    %134 = arith.addf %127, %133 : vector<8x64xf32>
    %c0_153 = arith.constant 0 : index
    %c0_154 = arith.constant 0 : index
    %c0_155 = arith.constant 0 : index
    %135 = vector.load %arg15[%c0_153, %c0_154, %c0_155] : memref<3x32x64xf32, #tpu.memory_space<vmem>>, vector<1x32x64xf32>
    %136 = vector.shape_cast %135 : vector<1x32x64xf32> to vector<32x64xf32>
    %cst_156 = arith.constant dense<0.000000e+00> : vector<4x64xf32>
    %137 = tpu.matmul %5, %136, %cst_156 {dimension_numbers = #tpu.dot_dimension_numbers<[1], [0], [0], [1], [0, 0, 1, 1], [], []>} : vector<4x32xf32>, vector<32x64xf32>, vector<4x64xf32> -> vector<4x64xf32>
    %c0_157 = arith.constant 0 : index
    %c0_158 = arith.constant 0 : index
    %c0_159 = arith.constant 0 : index
    %138 = vector.load %arg13[%c0_157, %c0_158, %c0_159] : memref<3x8x4xf32, #tpu.memory_space<vmem>>, vector<1x8x4xf32>
    %139 = vector.shape_cast %138 : vector<1x8x4xf32> to vector<8x4xf32>
    %cst_160 = arith.constant dense<0.000000e+00> : vector<8x64xf32>
    %140 = tpu.matmul %139, %137, %cst_160 {dimension_numbers = #tpu.dot_dimension_numbers<[1], [0], [0], [1], [0, 0, 1, 1], [], []>} : vector<8x4xf32>, vector<4x64xf32>, vector<8x64xf32> -> vector<8x64xf32>
    %c1_161 = arith.constant 1 : index
    %c0_162 = arith.constant 0 : index
    %c0_163 = arith.constant 0 : index
    %141 = vector.load %arg15[%c1_161, %c0_162, %c0_163] : memref<3x32x64xf32, #tpu.memory_space<vmem>>, vector<1x32x64xf32>
    %142 = vector.shape_cast %141 : vector<1x32x64xf32> to vector<32x64xf32>
    %cst_164 = arith.constant dense<0.000000e+00> : vector<4x64xf32>
    %143 = tpu.matmul %5, %142, %cst_164 {dimension_numbers = #tpu.dot_dimension_numbers<[1], [0], [0], [1], [0, 0, 1, 1], [], []>} : vector<4x32xf32>, vector<32x64xf32>, vector<4x64xf32> -> vector<4x64xf32>
    %c1_165 = arith.constant 1 : index
    %c0_166 = arith.constant 0 : index
    %c0_167 = arith.constant 0 : index
    %144 = vector.load %arg13[%c1_165, %c0_166, %c0_167] : memref<3x8x4xf32, #tpu.memory_space<vmem>>, vector<1x8x4xf32>
    %145 = vector.shape_cast %144 : vector<1x8x4xf32> to vector<8x4xf32>
    %cst_168 = arith.constant dense<0.000000e+00> : vector<8x64xf32>
    %146 = tpu.matmul %145, %143, %cst_168 {dimension_numbers = #tpu.dot_dimension_numbers<[1], [0], [0], [1], [0, 0, 1, 1], [], []>} : vector<8x4xf32>, vector<4x64xf32>, vector<8x64xf32> -> vector<8x64xf32>
    %147 = arith.addf %140, %146 : vector<8x64xf32>
    %c2_169 = arith.constant 2 : index
    %c0_170 = arith.constant 0 : index
    %c0_171 = arith.constant 0 : index
    %148 = vector.load %arg15[%c2_169, %c0_170, %c0_171] : memref<3x32x64xf32, #tpu.memory_space<vmem>>, vector<1x32x64xf32>
    %149 = vector.shape_cast %148 : vector<1x32x64xf32> to vector<32x64xf32>
    %cst_172 = arith.constant dense<0.000000e+00> : vector<4x64xf32>
    %150 = tpu.matmul %5, %149, %cst_172 {dimension_numbers = #tpu.dot_dimension_numbers<[1], [0], [0], [1], [0, 0, 1, 1], [], []>} : vector<4x32xf32>, vector<32x64xf32>, vector<4x64xf32> -> vector<4x64xf32>
    %c2_173 = arith.constant 2 : index
    %c0_174 = arith.constant 0 : index
    %c0_175 = arith.constant 0 : index
    %151 = vector.load %arg13[%c2_173, %c0_174, %c0_175] : memref<3x8x4xf32, #tpu.memory_space<vmem>>, vector<1x8x4xf32>
    %152 = vector.shape_cast %151 : vector<1x8x4xf32> to vector<8x4xf32>
    %cst_176 = arith.constant dense<0.000000e+00> : vector<8x64xf32>
    %153 = tpu.matmul %152, %150, %cst_176 {dimension_numbers = #tpu.dot_dimension_numbers<[1], [0], [0], [1], [0, 0, 1, 1], [], []>} : vector<8x4xf32>, vector<4x64xf32>, vector<8x64xf32> -> vector<8x64xf32>
    %154 = arith.addf %147, %153 : vector<8x64xf32>
    %155 = arith.addf %134, %154 : vector<8x64xf32>
    %c0_177 = arith.constant 0 : index
    %c0_178 = arith.constant 0 : index
    %156 = vector.load %arg16[%c0_177, %c0_178] : memref<1x64xf32, #tpu.memory_space<vmem>>, vector<1x64xf32>
    %157 = vector.broadcast %156 : vector<1x64xf32> to vector<8x64xf32>
    %158 = arith.addf %155, %157 : vector<8x64xf32>
    %cst_179 = arith.constant 0.000000e+00 : f32
    %159 = vector.broadcast %cst_179 : f32 to vector<8x64xf32>
    %160 = arith.maximumf %158, %159 : vector<8x64xf32>
    %c0_180 = arith.constant 0 : index
    %c0_181 = arith.constant 0 : index
    %c0_182 = arith.constant 0 : index
    %161 = vector.load %arg18[%c0_180, %c0_181, %c0_182] : memref<3x64x64xf32, #tpu.memory_space<vmem>>, vector<1x64x64xf32>
    %162 = vector.shape_cast %161 : vector<1x64x64xf32> to vector<64x64xf32>
    %cst_183 = arith.constant dense<0.000000e+00> : vector<8x64xf32>
    %163 = tpu.matmul %160, %162, %cst_183 {dimension_numbers = #tpu.dot_dimension_numbers<[1], [0], [0], [1], [0, 0, 1, 1], [], []>} : vector<8x64xf32>, vector<64x64xf32>, vector<8x64xf32> -> vector<8x64xf32>
    %c0_184 = arith.constant 0 : index
    %c0_185 = arith.constant 0 : index
    %c0_186 = arith.constant 0 : index
    %164 = vector.load %arg17[%c0_184, %c0_185, %c0_186] : memref<3x16x8xf32, #tpu.memory_space<vmem>>, vector<1x16x8xf32>
    %165 = vector.shape_cast %164 : vector<1x16x8xf32> to vector<16x8xf32>
    %cst_187 = arith.constant dense<0.000000e+00> : vector<16x64xf32>
    %166 = tpu.matmul %165, %163, %cst_187 {dimension_numbers = #tpu.dot_dimension_numbers<[1], [0], [0], [1], [0, 0, 1, 1], [], []>} : vector<16x8xf32>, vector<8x64xf32>, vector<16x64xf32> -> vector<16x64xf32>
    %c1_188 = arith.constant 1 : index
    %c0_189 = arith.constant 0 : index
    %c0_190 = arith.constant 0 : index
    %167 = vector.load %arg18[%c1_188, %c0_189, %c0_190] : memref<3x64x64xf32, #tpu.memory_space<vmem>>, vector<1x64x64xf32>
    %168 = vector.shape_cast %167 : vector<1x64x64xf32> to vector<64x64xf32>
    %cst_191 = arith.constant dense<0.000000e+00> : vector<8x64xf32>
    %169 = tpu.matmul %160, %168, %cst_191 {dimension_numbers = #tpu.dot_dimension_numbers<[1], [0], [0], [1], [0, 0, 1, 1], [], []>} : vector<8x64xf32>, vector<64x64xf32>, vector<8x64xf32> -> vector<8x64xf32>
    %c1_192 = arith.constant 1 : index
    %c0_193 = arith.constant 0 : index
    %c0_194 = arith.constant 0 : index
    %170 = vector.load %arg17[%c1_192, %c0_193, %c0_194] : memref<3x16x8xf32, #tpu.memory_space<vmem>>, vector<1x16x8xf32>
    %171 = vector.shape_cast %170 : vector<1x16x8xf32> to vector<16x8xf32>
    %cst_195 = arith.constant dense<0.000000e+00> : vector<16x64xf32>
    %172 = tpu.matmul %171, %169, %cst_195 {dimension_numbers = #tpu.dot_dimension_numbers<[1], [0], [0], [1], [0, 0, 1, 1], [], []>} : vector<16x8xf32>, vector<8x64xf32>, vector<16x64xf32> -> vector<16x64xf32>
    %173 = arith.addf %166, %172 : vector<16x64xf32>
    %c2_196 = arith.constant 2 : index
    %c0_197 = arith.constant 0 : index
    %c0_198 = arith.constant 0 : index
    %174 = vector.load %arg18[%c2_196, %c0_197, %c0_198] : memref<3x64x64xf32, #tpu.memory_space<vmem>>, vector<1x64x64xf32>
    %175 = vector.shape_cast %174 : vector<1x64x64xf32> to vector<64x64xf32>
    %cst_199 = arith.constant dense<0.000000e+00> : vector<8x64xf32>
    %176 = tpu.matmul %160, %175, %cst_199 {dimension_numbers = #tpu.dot_dimension_numbers<[1], [0], [0], [1], [0, 0, 1, 1], [], []>} : vector<8x64xf32>, vector<64x64xf32>, vector<8x64xf32> -> vector<8x64xf32>
    %c2_200 = arith.constant 2 : index
    %c0_201 = arith.constant 0 : index
    %c0_202 = arith.constant 0 : index
    %177 = vector.load %arg17[%c2_200, %c0_201, %c0_202] : memref<3x16x8xf32, #tpu.memory_space<vmem>>, vector<1x16x8xf32>
    %178 = vector.shape_cast %177 : vector<1x16x8xf32> to vector<16x8xf32>
    %cst_203 = arith.constant dense<0.000000e+00> : vector<16x64xf32>
    %179 = tpu.matmul %178, %176, %cst_203 {dimension_numbers = #tpu.dot_dimension_numbers<[1], [0], [0], [1], [0, 0, 1, 1], [], []>} : vector<16x8xf32>, vector<8x64xf32>, vector<16x64xf32> -> vector<16x64xf32>
    %180 = arith.addf %173, %179 : vector<16x64xf32>
    %c0_204 = arith.constant 0 : index
    %c0_205 = arith.constant 0 : index
    %181 = vector.load %arg19[%c0_204, %c0_205] : memref<1x64xf32, #tpu.memory_space<vmem>>, vector<1x64xf32>
    %182 = vector.broadcast %181 : vector<1x64xf32> to vector<16x64xf32>
    %183 = arith.addf %180, %182 : vector<16x64xf32>
    %c0_206 = arith.constant 0 : index
    %c0_207 = arith.constant 0 : index
    %c0_208 = arith.constant 0 : index
    %184 = vector.load %arg20[%c0_206, %c0_207, %c0_208] : memref<1x16x64xf32, #tpu.memory_space<vmem>>, vector<1x16x64xf32>
    %185 = vector.shape_cast %184 : vector<1x16x64xf32> to vector<16x64xf32>
    %186 = vector.shape_cast %183 : vector<16x64xf32> to vector<1x16x64xf32>
    tpu.vector_store %arg20[%c0_206, %c0_207, %c0_208], %186 {strides = array<i32>} : memref<1x16x64xf32, #tpu.memory_space<vmem>>, vector<1x16x64xf32>,
    %c0_209 = arith.constant 0 : index
    %c0_210 = arith.constant 0 : index
    %c0_211 = arith.constant 0 : index
    %187 = vector.load %arg21[%c0_209, %c0_210, %c0_211] : memref<1x8x32xf32, #tpu.memory_space<vmem>>, vector<1x8x32xf32>
    %188 = vector.shape_cast %187 : vector<1x8x32xf32> to vector<8x32xf32>
    %189 = vector.shape_cast %49 : vector<8x32xf32> to vector<1x8x32xf32>
    tpu.vector_store %arg21[%c0_209, %c0_210, %c0_211], %189 {strides = array<i32>} : memref<1x8x32xf32, #tpu.memory_space<vmem>>, vector<1x8x32xf32>,
    %c0_212 = arith.constant 0 : index
    %c0_213 = arith.constant 0 : index
    %c0_214 = arith.constant 0 : index
    %190 = vector.load %arg22[%c0_212, %c0_213, %c0_214] : memref<1x4x32xf32, #tpu.memory_space<vmem>>, vector<1x4x32xf32>
    %191 = vector.shape_cast %190 : vector<1x4x32xf32> to vector<4x32xf32>
    %192 = vector.shape_cast %114 : vector<4x32xf32> to vector<1x4x32xf32>
    tpu.vector_store %arg22[%c0_212, %c0_213, %c0_214], %192 {strides = array<i32>} : memref<1x4x32xf32, #tpu.memory_space<vmem>>, vector<1x4x32xf32>,
    return
  }
  func.func @transform_0(%arg0: i32) -> (i32, i32, i32) {
    %c0_i32 = arith.constant 0 : i32
    %c0_i32_0 = arith.constant 0 : i32
    %c0_i32_1 = arith.constant 0 : i32
    return %arg0, %c0_i32, %c0_i32_0 : i32, i32, i32
  }
  func.func @transform_1(%arg0: i32) -> (i32, i32, i32) {
    %c0_i32 = arith.constant 0 : i32
    %c0_i32_0 = arith.constant 0 : i32
    %c0_i32_1 = arith.constant 0 : i32
    return %arg0, %c0_i32, %c0_i32_0 : i32, i32, i32
  }
  func.func @transform_2(%arg0: i32) -> (i32, i32, i32) {
    %c0_i32 = arith.constant 0 : i32
    %c0_i32_0 = arith.constant 0 : i32
    %c0_i32_1 = arith.constant 0 : i32
    return %arg0, %c0_i32, %c0_i32_0 : i32, i32, i32
  }
  func.func @transform_3(%arg0: i32) -> (i32, i32, i32) {
    %c0_i32 = arith.constant 0 : i32
    %c0_i32_0 = arith.constant 0 : i32
    %c0_i32_1 = arith.constant 0 : i32
    %c0_i32_2 = arith.constant 0 : i32
    return %c0_i32, %c0_i32_0, %c0_i32_1 : i32, i32, i32
  }
  func.func @transform_4(%arg0: i32) -> (i32, i32, i32) {
    %c0_i32 = arith.constant 0 : i32
    %c0_i32_0 = arith.constant 0 : i32
    %c0_i32_1 = arith.constant 0 : i32
    %c0_i32_2 = arith.constant 0 : i32
    return %c0_i32, %c0_i32_0, %c0_i32_1 : i32, i32, i32
  }
  func.func @transform_5(%arg0: i32) -> (i32, i32, i32) {
    %c0_i32 = arith.constant 0 : i32
    %c0_i32_0 = arith.constant 0 : i32
    %c0_i32_1 = arith.constant 0 : i32
    %c0_i32_2 = arith.constant 0 : i32
    return %c0_i32, %c0_i32_0, %c0_i32_1 : i32, i32, i32
  }
  func.func @transform_6(%arg0: i32) -> (i32, i32, i32) {
    %c0_i32 = arith.constant 0 : i32
    %c0_i32_0 = arith.constant 0 : i32
    %c0_i32_1 = arith.constant 0 : i32
    %c0_i32_2 = arith.constant 0 : i32
    return %c0_i32, %c0_i32_0, %c0_i32_1 : i32, i32, i32
  }
  func.func @transform_7(%arg0: i32) -> (i32, i32, i32) {
    %c0_i32 = arith.constant 0 : i32
    %c0_i32_0 = arith.constant 0 : i32
    %c0_i32_1 = arith.constant 0 : i32
    %c0_i32_2 = arith.constant 0 : i32
    return %c0_i32, %c0_i32_0, %c0_i32_1 : i32, i32, i32
  }
  func.func @transform_8(%arg0: i32) -> (i32, i32, i32) {
    %c0_i32 = arith.constant 0 : i32
    %c0_i32_0 = arith.constant 0 : i32
    %c0_i32_1 = arith.constant 0 : i32
    %c0_i32_2 = arith.constant 0 : i32
    return %c0_i32, %c0_i32_0, %c0_i32_1 : i32, i32, i32
  }
  func.func @transform_9(%arg0: i32) -> (i32, i32, i32) {
    %c0_i32 = arith.constant 0 : i32
    %c0_i32_0 = arith.constant 0 : i32
    %c0_i32_1 = arith.constant 0 : i32
    %c0_i32_2 = arith.constant 0 : i32
    return %c0_i32, %c0_i32_0, %c0_i32_1 : i32, i32, i32
  }
  func.func @transform_10(%arg0: i32) -> (i32, i32, i32) {
    %c0_i32 = arith.constant 0 : i32
    %c0_i32_0 = arith.constant 0 : i32
    %c0_i32_1 = arith.constant 0 : i32
    %c0_i32_2 = arith.constant 0 : i32
    return %c0_i32, %c0_i32_0, %c0_i32_1 : i32, i32, i32
  }
  func.func @transform_11(%arg0: i32) -> (i32, i32, i32) {
    %c0_i32 = arith.constant 0 : i32
    %c0_i32_0 = arith.constant 0 : i32
    %c0_i32_1 = arith.constant 0 : i32
    %c0_i32_2 = arith.constant 0 : i32
    return %c0_i32, %c0_i32_0, %c0_i32_1 : i32, i32, i32
  }
  func.func @transform_12(%arg0: i32) -> (i32, i32, i32) {
    %c0_i32 = arith.constant 0 : i32
    %c0_i32_0 = arith.constant 0 : i32
    %c0_i32_1 = arith.constant 0 : i32
    %c0_i32_2 = arith.constant 0 : i32
    return %c0_i32, %c0_i32_0, %c0_i32_1 : i32, i32, i32
  }
  func.func @transform_13(%arg0: i32) -> (i32, i32, i32) {
    %c0_i32 = arith.constant 0 : i32
    %c0_i32_0 = arith.constant 0 : i32
    %c0_i32_1 = arith.constant 0 : i32
    %c0_i32_2 = arith.constant 0 : i32
    return %c0_i32, %c0_i32_0, %c0_i32_1 : i32, i32, i32
  }
  func.func @transform_14(%arg0: i32) -> (i32, i32, i32) {
    %c0_i32 = arith.constant 0 : i32
    %c0_i32_0 = arith.constant 0 : i32
    %c0_i32_1 = arith.constant 0 : i32
    %c0_i32_2 = arith.constant 0 : i32
    return %c0_i32, %c0_i32_0, %c0_i32_1 : i32, i32, i32
  }
  func.func @transform_15(%arg0: i32) -> (i32, i32) {
    %c0_i32 = arith.constant 0 : i32
    %c0_i32_0 = arith.constant 0 : i32
    %c0_i32_1 = arith.constant 0 : i32
    return %c0_i32, %c0_i32_0 : i32, i32
  }
  func.func @transform_16(%arg0: i32) -> (i32, i32, i32) {
    %c0_i32 = arith.constant 0 : i32
    %c0_i32_0 = arith.constant 0 : i32
    %c0_i32_1 = arith.constant 0 : i32
    %c0_i32_2 = arith.constant 0 : i32
    return %c0_i32, %c0_i32_0, %c0_i32_1 : i32, i32, i32
  }
  func.func @transform_17(%arg0: i32) -> (i32, i32, i32) {
    %c0_i32 = arith.constant 0 : i32
    %c0_i32_0 = arith.constant 0 : i32
    %c0_i32_1 = arith.constant 0 : i32
    %c0_i32_2 = arith.constant 0 : i32
    return %c0_i32, %c0_i32_0, %c0_i32_1 : i32, i32, i32
  }
  func.func @transform_18(%arg0: i32) -> (i32, i32) {
    %c0_i32 = arith.constant 0 : i32
    %c0_i32_0 = arith.constant 0 : i32
    %c0_i32_1 = arith.constant 0 : i32
    return %c0_i32, %c0_i32_0 : i32, i32
  }
  func.func @transform_19(%arg0: i32) -> (i32, i32, i32) {
    %c0_i32 = arith.constant 0 : i32
    %c0_i32_0 = arith.constant 0 : i32
    %c0_i32_1 = arith.constant 0 : i32
    return %arg0, %c0_i32, %c0_i32_0 : i32, i32, i32
  }
  func.func @transform_20(%arg0: i32) -> (i32, i32, i32) {
    %c0_i32 = arith.constant 0 : i32
    %c0_i32_0 = arith.constant 0 : i32
    %c0_i32_1 = arith.constant 0 : i32
    return %arg0, %c0_i32, %c0_i32_0 : i32, i32, i32
  }
  func.func @transform_21(%arg0: i32) -> (i32, i32, i32) {
    %c0_i32 = arith.constant 0 : i32
    %c0_i32_0 = arith.constant 0 : i32
    %c0_i32_1 = arith.constant 0 : i32
    return %arg0, %c0_i32, %c0_i32_0 : i32, i32, i32
  }
}

</mosaic_0001>

<bundles_post_ra>
// kernel: tile.18
= control target key start
LH: loop header
LB: loop body
LE: loop exit
PB: predicated region body
PF: predicated region fallthrough
CT: control target
= control target key end

     0   :  { %s28_s0 = inlined_call_operand.vmem [shape: f32[4], index: 0, kind: input, shape index: {}]   ;;  %s29_s1 = inlined_call_operand.vmem [shape: f32[16,4], index: 1, kind: output, shape index: {}]  }
   0x1   :  { %v4_v0 = vld [vmem:[%s28_s0] ss:$0 sm:$0xff] }
   0x2   :  { %5 = vst [vmem:[%s29_s1] sm:$0xff] %v4_v0  ;;  %8 = vst [vmem:[%s29_s1 + $0x8] sm:$0xff] %v4_v0 }

// kernel: tile.19
= control target key start
LH: loop header
LB: loop body
LE: loop exit
PB: predicated region body
PF: predicated region fallthrough
CT: control target
= control target key end

     0   :  { %s131_s10 = smov 60   ;;  %s132_s11 = smov 52   ;;  %vm3_vm0 = vcmask 31744   ;;  %vm9_vm1 = vcmask 523744   ;;  %vm15_vm2 = vcmask 490944   ;;  %vm21_vm3 = vcmask 458144   ;;  %s207_s0 = inlined_call_operand.vmem [shape: f32[16,4], index: 0, kind: input, shape index: {}]   ;;  %s208_s1 = inlined_call_operand.vmem [shape: f32[1,64], index: 1, kind: output, shape index: {}]  }
   0x1   :  { %v101_v0 = vld [vmem:[%s207_s0 + $0xf] sm:$0x1]   ;;  %v103_v1 = vld [vmem:[%s207_s0 + $0xd] sm:$0x1]   ;;  %v102_v2 = vld [vmem:[%s207_s0 + $0xe] sm:$0x1]  }
   0x2   :  { %7 = vrot.lane.b32.xlu0 %v101_v0, %s131_s10  ;;  %19 = vrot.lane.b32.xlu1 %v103_v1, %s132_s11  ;;  %v104_v3 = vld [vmem:[%s207_s0 + $0xc] sm:$0x1]   ;;  %s133_s16 = smov 56   ;;  %s134_s17 = smov 48   ;;  %v105_v4 = vld [vmem:[%s207_s0 + $0xb] sm:$0x1]  }
   0x3   :  { %v106_v5 = vld [vmem:[%s207_s0 + $0xa] sm:$0x1]   ;;  %v2_v6 = vld [vmem:[%s207_s0] sm:$0x1]   ;;  %s135_s24 = smov 44   ;;  %s136_s25 = smov 40  }
   0x4   :  { %4 = vst.msk [vmem:[#allocation0] sm:$0x1] %vm3_vm0, %v2_v6   ;;  %v107_v7 = vld [vmem:[%s207_s0 + $0x9] sm:$0x1]   ;;  %v108_v8 = vld [vmem:[%s207_s0 + $0x8] sm:$0x1]  }
   0x5   :  { %s137_s30 = smov 36   ;;  %s138_s2 = smov 32   ;;  %v109_v9 = vld [vmem:[%s207_s0 + $0x7] sm:$0x1]   ;;  %v110_v10 = vld [vmem:[%s207_s0 + $0x6] sm:$0x1]  }
   0x6   :  { %13 = vrot.lane.b32.xlu0 %v102_v2, %s133_s16  ;;  %25 = vrot.lane.b32.xlu1 %v104_v3, %s134_s17  ;;  %s139_s7 = smov 28   ;;  %s140_s8 = smov 24   ;;  %v111_v11 = vld [vmem:[%s207_s0 + $0x5] sm:$0x1]   ;;  %v112_v12 = vld [vmem:[%s207_s0 + $0x4] sm:$0x1]  }
   0x7   :  { %s141_s13 = smov 20   ;;  %s142_s14 = smov 16   ;;  %v113_v13 = vld [vmem:[%s207_s0 + $0x3] sm:$0x1]   ;;  %v114_v14 = vld [vmem:[%s207_s0 + $0x2] sm:$0x1]  }
   0x8   :  { %s143_s19 = smov 12   ;;  %s144_s20 = smov 8   ;;  %v115_v15 = vld [vmem:[%s207_s0 + $0x1] sm:$0x1]   ;;  %vm27_vm4 = vcmask 425344   ;;  %vm33_vm5 = vcmask 392544  }
   0x9   :  { %s145_s0 = smov 4   ;;  %vm39_vm6 = vcmask 359744   ;;  %vm45_vm7 = vcmask 326944   ;;  %vm51_vm8 = vcmask 294144   ;;  %vm57_vm9 = vcmask 261344  }
   0xa   :  { %31 = vrot.lane.b32.xlu0 %v105_v4, %s135_s24  ;;  %37 = vrot.lane.b32.xlu1 %v106_v5, %s136_s25  ;;  %vm63_vm10 = vcmask 228544   ;;  %vm69_vm11 = vcmask 195744   ;;  %vm75_vm12 = vcmask 162944   ;;  %vm81_vm13 = vcmask 130144  }
   0xb   :  { %vm87_vm14 = vcmask 97344   ;;  %vm93_vm15 = vcmask 64544  }
   0xe   :  { %43 = vrot.lane.b32.xlu0 %v107_v7, %s137_s30  ;;  %49 = vrot.lane.b32.xlu1 %v108_v8, %s138_s2 }
  0x12   :  { %55 = vrot.lane.b32.xlu0 %v109_v9, %s139_s7  ;;  %61 = vrot.lane.b32.xlu1 %v110_v10, %s140_s8 }
  0x16   :  { %67 = vrot.lane.b32.xlu0 %v111_v11, %s141_s13  ;;  %73 = vrot.lane.b32.xlu1 %v112_v12, %s142_s14 }
  0x1a   :  { %79 = vrot.lane.b32.xlu0 %v113_v13, %s143_s19  ;;  %85 = vrot.lane.b32.xlu1 %v114_v14, %s144_s20 }
  0x1e   :  { %91 = vrot.lane.b32.xlu0 %v115_v15, %s145_s0 }
  0x74   :  { %v8_v16 = vpop.permute.xlu0 %7   ;;  %v20_v17 = vpop.permute.xlu1 %19  }
  0x75   :  { %10 = vst.msk [vmem:[#allocation0] sm:$0x1] %vm9_vm1, %v8_v16  }
  0x78   :  { %v14_v18 = vpop.permute.xlu0 %13   ;;  %v26_v19 = vpop.permute.xlu1 %25  }
  0x79   :  { %16 = vst.msk [vmem:[#allocation0] sm:$0x1] %vm15_vm2, %v14_v18  }
  0x7a   :  { %22 = vst.msk [vmem:[#allocation0] sm:$0x1] %vm21_vm3, %v20_v17  }
  0x7b   :  { %28 = vst.msk [vmem:[#allocation0] sm:$0x1] %vm27_vm4, %v26_v19  }
  0x7c   :  { %v32_v20 = vpop.permute.xlu0 %31   ;;  %v38_v21 = vpop.permute.xlu1 %37  }
  0x7d   :  { %34 = vst.msk [vmem:[#allocation0] sm:$0x1] %vm33_vm5, %v32_v20  }
  0x7e   :  { %40 = vst.msk [vmem:[#allocation0] sm:$0x1] %vm39_vm6, %v38_v21  }
  0x80   :  { %v44_v22 = vpop.permute.xlu0 %43   ;;  %v50_v23 = vpop.permute.xlu1 %49  }
  0x81   :  { %46 = vst.msk [vmem:[#allocation0] sm:$0x1] %vm45_vm7, %v44_v22  }
  0x82   :  { %52 = vst.msk [vmem:[#allocation0] sm:$0x1] %vm51_vm8, %v50_v23  }
  0x84   :  { %v56_v24 = vpop.permute.xlu0 %55   ;;  %v62_v25 = vpop.permute.xlu1 %61  }
  0x85   :  { %58 = vst.msk [vmem:[#allocation0] sm:$0x1] %vm57_vm9, %v56_v24  }
  0x86   :  { %64 = vst.msk [vmem:[#allocation0] sm:$0x1] %vm63_vm10, %v62_v25  }
  0x88   :  { %v68_v26 = vpop.permute.xlu0 %67   ;;  %v74_v27 = vpop.permute.xlu1 %73  }
  0x89   :  { %70 = vst.msk [vmem:[#allocation0] sm:$0x1] %vm69_vm11, %v68_v26  }
  0x8a   :  { %76 = vst.msk [vmem:[#allocation0] sm:$0x1] %vm75_vm12, %v74_v27  }
  0x8c   :  { %v80_v28 = vpop.permute.xlu0 %79   ;;  %v86_v29 = vpop.permute.xlu1 %85  }
  0x8d   :  { %82 = vst.msk [vmem:[#allocation0] sm:$0x1] %vm81_vm13, %v80_v28  }
  0x8e   :  { %88 = vst.msk [vmem:[#allocation0] sm:$0x1] %vm87_vm14, %v86_v29  }
  0x90   :  { %v92_v30 = vpop.permute.xlu0 %91  }
  0x91   :  { %94 = vst.msk [vmem:[#allocation0] sm:$0x1] %vm93_vm15, %v92_v30  }
  0x98   :  { %v98_v31 = vld [vmem:[#allocation0] sm:$0x1] }
  0x99   :  { %100 = vst [vmem:[%s208_s1] sm:$0x1] %v98_v31 }

// kernel: tile.13
= control target key start
LH: loop header
LB: loop body
LE: loop exit
PB: predicated region body
PF: predicated region fallthrough
CT: control target
= control target key end

     0   :  { %s22_s0 = inlined_call_operand.vmem [shape: f32[8], index: 0, kind: input, shape index: {}]   ;;  %s23_s1 = inlined_call_operand.vmem [shape: f32[8,8], index: 1, kind: output, shape index: {}]  }
   0x1   :  { %v4_v0 = vld [vmem:[%s22_s0] ss:$0 sm:$0xff] }
   0x2   :  { %5 = vst [vmem:[%s23_s1] sm:$0xff] %v4_v0 }

// kernel: tile.14
= control target key start
LH: loop header
LB: loop body
LE: loop exit
PB: predicated region body
PF: predicated region fallthrough
CT: control target
= control target key end

     0   :  { %s67_s10 = smov 56   ;;  %s68_s11 = smov 40   ;;  %vm3_vm0 = vcmask 64512   ;;  %vm9_vm1 = vcmask 523712   ;;  %vm15_vm2 = vcmask 458112   ;;  %vm21_vm3 = vcmask 392512   ;;  %s111_s0 = inlined_call_operand.vmem [shape: f32[8,8], index: 0, kind: input, shape index: {}]   ;;  %s112_s1 = inlined_call_operand.vmem [shape: f32[1,64], index: 1, kind: output, shape index: {}]  }
   0x1   :  { %v53_v0 = vld [vmem:[%s111_s0 + $0x7] sm:$0x1]   ;;  %v55_v1 = vld [vmem:[%s111_s0 + $0x5] sm:$0x1]   ;;  %v54_v2 = vld [vmem:[%s111_s0 + $0x6] sm:$0x1]  }
   0x2   :  { %7 = vrot.lane.b32.xlu0 %v53_v0, %s67_s10  ;;  %19 = vrot.lane.b32.xlu1 %v55_v1, %s68_s11  ;;  %v56_v3 = vld [vmem:[%s111_s0 + $0x4] sm:$0x1]   ;;  %v2_v4 = vld [vmem:[%s111_s0] sm:$0x1]   ;;  %s69_s18 = smov 48   ;;  %s70_s19 = smov 32  }
   0x3   :  { %4 = vst.msk [vmem:[#allocation0] sm:$0x1] %vm3_vm0, %v2_v4   ;;  %v57_v5 = vld [vmem:[%s111_s0 + $0x3] sm:$0x1]   ;;  %v58_v6 = vld [vmem:[%s111_s0 + $0x2] sm:$0x1]  }
   0x4   :  { %s71_s24 = smov 24   ;;  %s72_s25 = smov 16   ;;  %v59_v7 = vld [vmem:[%s111_s0 + $0x1] sm:$0x1]   ;;  %vm27_vm4 = vcmask 326912   ;;  %vm33_vm5 = vcmask 261312  }
   0x5   :  { %s73_s0 = smov 8   ;;  %vm39_vm6 = vcmask 195712   ;;  %vm45_vm7 = vcmask 130112  }
   0x6   :  { %13 = vrot.lane.b32.xlu0 %v54_v2, %s69_s18  ;;  %25 = vrot.lane.b32.xlu1 %v56_v3, %s70_s19 }
   0xa   :  { %31 = vrot.lane.b32.xlu0 %v57_v5, %s71_s24  ;;  %37 = vrot.lane.b32.xlu1 %v58_v6, %s72_s25 }
   0xe   :  { %43 = vrot.lane.b32.xlu0 %v59_v7, %s73_s0 }
  0x74   :  { %v8_v8 = vpop.permute.xlu0 %7   ;;  %v20_v9 = vpop.permute.xlu1 %19  }
  0x75   :  { %10 = vst.msk [vmem:[#allocation0] sm:$0x1] %vm9_vm1, %v8_v8  }
  0x78   :  { %v14_v10 = vpop.permute.xlu0 %13   ;;  %v26_v11 = vpop.permute.xlu1 %25  }
  0x79   :  { %16 = vst.msk [vmem:[#allocation0] sm:$0x1] %vm15_vm2, %v14_v10  }
  0x7a   :  { %22 = vst.msk [vmem:[#allocation0] sm:$0x1] %vm21_vm3, %v20_v9  }
  0x7b   :  { %28 = vst.msk [vmem:[#allocation0] sm:$0x1] %vm27_vm4, %v26_v11  }
  0x7c   :  { %v32_v12 = vpop.permute.xlu0 %31   ;;  %v38_v13 = vpop.permute.xlu1 %37  }
  0x7d   :  { %34 = vst.msk [vmem:[#allocation0] sm:$0x1] %vm33_vm5, %v32_v12  }
  0x7e   :  { %40 = vst.msk [vmem:[#allocation0] sm:$0x1] %vm39_vm6, %v38_v13  }
  0x80   :  { %v44_v14 = vpop.permute.xlu0 %43  }
  0x81   :  { %46 = vst.msk [vmem:[#allocation0] sm:$0x1] %vm45_vm7, %v44_v14  }
  0x88   :  { %v50_v15 = vld [vmem:[#allocation0] sm:$0x1] }
  0x89   :  { %52 = vst [vmem:[%s112_s1] sm:$0x1] %v50_v15 }

// kernel: hourglass_1_forward.1
= control target key start
LH: loop header
LB: loop body
LE: loop exit
PB: predicated region body
PF: predicated region fallthrough
CT: control target
= control target key end

     0   :  { %s6452_s0 = inlined_call_operand.vmem [shape: f32[2,16,64], index: 0, kind: input, shape index: {}]   ;;  %s6453_s1 = inlined_call_operand.vmem [shape: f32[2,8,32], index: 1, kind: input, shape index: {}]   ;;  %s6454_s2 = inlined_call_operand.vmem [shape: f32[2,4,32], index: 2, kind: input, shape index: {}]   ;;  %s6455_s3 = inlined_call_operand.vmem [shape: f32[3,8,16], index: 3, kind: input, shape index: {}]   ;;  %s6456_s4 = inlined_call_operand.vmem [shape: f32[3,64,32], index: 4, kind: input, shape index: {}]   ;;  %s6457_s5 = inlined_call_operand.vmem [shape: f32[3,8,8], index: 5, kind: input, shape index: {}]   ;;  %s6458_s6 = inlined_call_operand.vmem [shape: f32[3,32,32], index: 6, kind: input, shape index: {}]   ;;  %s6459_s7 = inlined_call_operand.vmem [shape: f32[3,4,8], index: 7, kind: input, shape index: {}]   ;;  %s6460_s8 = inlined_call_operand.vmem [shape: f32[3,32,32], index: 8, kind: input, shape index: {}]   ;;  %s6461_s9 = inlined_call_operand.vmem [shape: f32[3,32,32], index: 9, kind: input, shape index: {}]   ;;  %s6462_s10 = inlined_call_operand.vmem [shape: f32[3,4,4], index: 10, kind: input, shape index: {}]   ;;  %s6463_s11 = inlined_call_operand.vmem [shape: f32[3,32,32], index: 11, kind: input, shape index: {}]   ;;  %s6464_s12 = inlined_call_operand.vmem [shape: f32[3,8,4], index: 12, kind: input, shape index: {}]   ;;  %s6465_s13 = inlined_call_operand.vmem [shape: f32[3,32,64], index: 13, kind: input, shape index: {}]   ;;  %s6466_s14 = inlined_call_operand.vmem [shape: f32[3,32,64], index: 14, kind: input, shape index: {}]   ;;  %s6467_s15 = inlined_call_operand.vmem [shape: f32[1,64], index: 15, kind: input, shape index: {}]   ;;  %s6468_s16 = inlined_call_operand.vmem [shape: f32[3,16,8], index: 16, kind: input, shape index: {}]   ;;  %s6469_s17 = inlined_call_operand.vmem [shape: f32[3,64,64], index: 17, kind: input, shape index: {}]   ;;  %s6470_s18 = inlined_call_operand.vmem [shape: f32[1,64], index: 18, kind: input, shape index: {}]   ;;  %s6471_s19 = inlined_call_operand.vmem [shape: f32[2,16,64], index: 19, kind: output, shape index: {0}]   ;;  %s6472_s20 = inlined_call_operand.vmem [shape: f32[2,8,32], index: 20, kind: output, shape index: {1}]   ;;  %s6473_s21 = inlined_call_operand.vmem [shape: f32[2,4,32], index: 21, kind: output, shape index: {2}]  }
   0x1   :  { %6479 = sst [smem:[#allocation2_spill]] %s6452_s0 }
   0x2   :  { %6480 = sst [smem:[#allocation3_spill]] %s6453_s1 }
   0x3   :  { %6481 = sst [smem:[#allocation4_spill]] %s6454_s2  ;;  %s5750_s2 = smov 0  }
   0x4   :  { %6482 = sst [smem:[#allocation5_spill]] %s6455_s3 }
   0x5   :  { %6483 = sst [smem:[#allocation6_spill]] %s6456_s4 }
   0x6   :  { %6484 = sst [smem:[#allocation7_spill]] %s6457_s5 }
   0x7   :  { %6485 = sst [smem:[#allocation8_spill]] %s6458_s6 }
   0x8 LB: > { %s4577_s25 = sadd.s32 4294967295, %s5635_s2   ;;  %p4581_p0 = scmp.ge.s32.totalorder %s5635_s2, 1  ;;  %s5635_s2 = sphi %s5750_s2, %s32_s2  }
   0x9   : > { %p610_p1 = scmp.lt.s32.totalorder %s5635_s2, 3 }
   0xb   : > { %p611_p2 = pnand %p4581_p0, %p610_p1 }
   0xc   : > { %s6486_s3 = sld [smem:[#allocation6_spill]] (!%p611_p2)  ;;  %p686_p3 = scmp.lt.s32.totalorder (!%p611_p2), %s4577_s25, 1  ;;  %vm724_vm0 = vcmask (!%p611_p2), 523264   ;;  %v5637_v20 = vmov (!%p611_p2), 0.0|0.0   ;;  %vm5638_vm1 = vmmov (!%p611_p2), 0   ;;  %v5639_v24 = vmov (!%p611_p2), 0.0  }
   0xd   : > { %614 = sbr.rel (%p611_p2) target bundleno = 3604 (0xe14), region = 96  ;;  %s6487_s5 = sld [smem:[#allocation2_spill]] (!%p611_p2)  ;;  %vm893_vm2 = vcmask (!%p611_p2), 130048   ;;  %vm1205_vm3 = vcmask (!%p611_p2), 261120   ;;  %vm1357_vm4 = vcmask (!%p611_p2), 64512   ;;  %vm2707_vm5 = vcmask (!%p611_p2), 1043456  }
   0xe   : > { %s6488_s27 = sld [smem:[#allocation5_spill]] (!%p611_p2)  ;;  %s6489_s6 = sld [smem:[#allocation8_spill]] (!%p611_p2)  ;;  %vm2703_vm6 = vcmask (!%p611_p2), 31744   ;;  %vm4434_vm7 = vcmask (!%p611_p2), 257024  }
   0xf   : > { %s6490_s23 = sld [smem:[#allocation7_spill]] (!%p611_p2)  ;;  %s6491_s1 = sld [smem:[#allocation3_spill]] (!%p611_p2) }
  0x10   : > { %s6492_s4 = sld [smem:[#allocation4_spill]] (!%p611_p2) }
  0x12   : > { %v4592_v0 = vld [vmem:[%s6486_s3 + $0x40] sm:$0xff] (!%p611_p2)  ;;  %v4593_v1 = vld [vmem:[%s6486_s3 + $0x48] sm:$0xff] (!%p611_p2)  ;;  %v4594_v2 = vld [vmem:[%s6486_s3 + $0x50] sm:$0xff] (!%p611_p2) }
  0x13   : > { %v5408_v3 = vpack.c.bf16 (!%p611_p2), %v4593_v1, %v4592_v0  ;;  %v4595_v4 = vld [vmem:[%s6486_s3 + $0x58] sm:$0xff] (!%p611_p2)  ;;  %v4596_v6 = vld [vmem:[%s6486_s3 + $0x60] sm:$0xff] (!%p611_p2)  ;;  %v4597_v7 = vld [vmem:[%s6486_s3 + $0x68] sm:$0xff] (!%p611_p2) }
  0x14   : > { %v5412_v5 = vpack.c.bf16 %v4595_v4, %v4594_v2  ;;  %s6495_s25 = smov (!%p686_p3, %s4577_s25), 1  ;;  %v716_v8 = vld [vmem:[%s6486_s3] sm:$0xff]  ;;  %v717_v9 = vld [vmem:[%s6486_s3 + $0x8] sm:$0xff]  ;;  %v5416_v11 = vpack.c.bf16 %v4597_v7, %v4596_v6  ;;  %v4598_v12 = vld [vmem:[%s6486_s3 + $0x70] sm:$0xff] }
  0x15   : > { %5409 = vmatprep.subr.bf16.mxu1 %v5408_v3  ;;  %s6477_s0 = sshll.u32 %s6495_s25, 4  ;;  %v5392_v10 = vpack.c.bf16 %v717_v9, %v716_v8  ;;  %v4599_v13 = vld [vmem:[%s6486_s3 + $0x78] sm:$0xff]  ;;  %v718_v17 = vld [vmem:[%s6486_s3 + $0x10] sm:$0xff]  ;;  %v720_v21 = vld [vmem:[%s6486_s3 + $0x20] sm:$0xff] }
  0x16   : > { %5411 = vmatpush3.bf16.msra.mxu1 %v5408_v3  ;;  %s690_s22 = scalar_lea.vmem %s6487_s5, %s6477_s0  ;;  %v5420_v15 = vpack.c.bf16 %v4599_v13, %v4598_v12  ;;  %v719_v18 = vld [vmem:[%s6486_s3 + $0x18] sm:$0xff]  ;;  %v721_v22 = vld [vmem:[%s6486_s3 + $0x28] sm:$0xff]  ;;  %v722_v25 = vld [vmem:[%s6486_s3 + $0x30] sm:$0xff]  ;;  %s4584_s5 = sshll.u32 %s6495_s25, 3 }
  0x17   : > { %5413 = vmatprep.subr.bf16.mxu1 %v5412_v5  ;;  %v712_v14 = vld [vmem:[%s690_s22] sm:$0xff]  ;;  %5393 = vmatprep.subr.bf16.mxu0 %v5392_v10  ;;  %v713_v16 = vld [vmem:[%s690_s22 + $0x8] sm:$0xff]  ;;  %v5396_v19 = vpack.c.bf16 %v719_v18, %v718_v17  ;;  %v5400_v23 = vpack.c.bf16 %v721_v22, %v720_v21  ;;  %v723_v26 = vld [vmem:[%s6486_s3 + $0x38] sm:$0xff]  ;;  %s707_s24 = scalar_lea.vmem %s6472_s20, %s4584_s5 }
  0x18   : > { %4989 = vmatprep.mubr.msk.f32.mxu1 %vm724_vm0, %v712_v14  ;;  %5395 = vmatpush3.bf16.msra.mxu0 %v5392_v10  ;;  %v5404_v27 = vpack.c.bf16 %v723_v26, %v722_v25  ;;  %v4605_v28 = vld [vmem:[%s6486_s3 + $0x80] sm:$0xff]  ;;  %v4606_v29 = vld [vmem:[%s6486_s3 + $0x88] sm:$0xff]  ;;  %v4607_v34 = vld [vmem:[%s6486_s3 + $0x90] sm:$0xff] }
  0x19   : > { %4970 = vmatprep.mubr.msk.f32.mxu0 %vm724_vm0, %v712_v14  ;;  %5397 = vmatprep.subr.bf16.mxu0 %v5396_v19  ;;  %v5430_v32 = vpack.c.bf16 %v4606_v29, %v4605_v28  ;;  %v4608_v35 = vld [vmem:[%s6486_s3 + $0x98] sm:$0xff]  ;;  %v4602_v36 = vld [vmem:[%s6488_s27 + $0x8] sm:$0xff]  ;;  %v4609_v38 = vld [vmem:[%s6486_s3 + $0xa0] sm:$0xff] }
  0x1a   : > { %5415 = vmatpush3.bf16.msra.mxu1 %v5412_v5  ;;  %v5434_v37 = vpack.c.bf16 %v4608_v35, %v4607_v34  ;;  %v4610_v39 = vld [vmem:[%s6486_s3 + $0xa8] sm:$0xff]  ;;  %v4611_v41 = vld [vmem:[%s6486_s3 + $0xb0] sm:$0xff]  ;;  %v4612_v42 = vld [vmem:[%s6486_s3 + $0xb8] sm:$0xff] }
  0x1b   : > { %5417 = vmatprep.subr.bf16.mxu1 %v5416_v11  ;;  %v5438_v40 = vpack.c.bf16 %v4610_v39, %v4609_v38  ;;  %v5442_v43 = vpack.c.bf16 %v4612_v42, %v4611_v41  ;;  %v806_v47 = vld [vmem:[%s6488_s27] sm:$0xff]  ;;  %v4619_v49 = vld [vmem:[%s6489_s6 + $0x28] sm:$0xff]  ;;  %v4615_v58 = vld [vmem:[%s6488_s27 + $0x10] sm:$0xff] }
  0x1c   : > { %5399 = vmatpush3.bf16.msra.mxu0 %v5396_v19  ;;  %v4618_v48 = vld [vmem:[%s6489_s6 + $0x20] sm:$0xff]  ;;  %v1202_v56 = vld [vmem:[%s6489_s6 + $0x8] sm:$0xff]  ;;  %v4620_v60 = vld [vmem:[%s6489_s6 + $0x30] sm:$0xff] }
  0x1d   : > { %5401 = vmatprep.subr.bf16.mxu0 %v5400_v23  ;;  %v5456_v50 = vpack.c.bf16 %v4619_v49, %v4618_v48  ;;  %v1201_v55 = vld [vmem:[%s6489_s6] sm:$0xff]  ;;  %v4621_v61 = vld [vmem:[%s6489_s6 + $0x38] sm:$0xff]  ;;  %v1203_v63 = vld [vmem:[%s6489_s6 + $0x10] sm:$0xff] }
  0x1e   : > { %5419 = vmatpush3.bf16.msra.mxu1 %v5416_v11  ;;  %v5450_v59 = vpack.c.bf16 %v1202_v56, %v1201_v55  ;;  %v5459_v62 = vpack.c.bf16 %v4621_v61, %v4620_v60  ;;  %v1204_v0 = vld [vmem:[%s6489_s6 + $0x18] sm:$0xff]  ;;  %v4626_v2 = vld [vmem:[%s6489_s6 + $0x40] sm:$0xff]  ;;  %v4627_v3 = vld [vmem:[%s6489_s6 + $0x48] sm:$0xff] }
  0x1f   : > { %5421 = vmatprep.subr.bf16.mxu1 %v5420_v15  ;;  %v5453_v1 = vpack.c.bf16 %v1204_v0, %v1203_v63  ;;  %v5462_v7 = vpack.c.bf16 %v4627_v3, %v4626_v2  ;;  %v4628_v9 = vld [vmem:[%s6489_s6 + $0x50] sm:$0xff]  ;;  %v4629_v10 = vld [vmem:[%s6489_s6 + $0x58] sm:$0xff]  ;;  %v4634_v12 = vld [vmem:[%s6460_s8 + $0x20] sm:$0xff]  ;;  %s4585_s6 = sshll.u32 %s6495_s25, 2 }
  0x20   : > { %5403 = vmatpush3.bf16.msra.mxu0 %v5400_v23  ;;  %v5465_v11 = vpack.c.bf16 %v4629_v10, %v4628_v9  ;;  %v4635_v13 = vld [vmem:[%s6460_s8 + $0x28] sm:$0xff]  ;;  %v1279_v25 = vld [vmem:[%s6490_s23] sm:$0xff]  ;;  %v4644_v41 = vld [vmem:[%s6460_s8 + $0x50] sm:$0xff]  ;;  %s711_s0 = scalar_lea.vmem %s6473_s21, %s4585_s6  ;;  %s698_s30 = scalar_lea.vmem %s6492_s4, %s4585_s6 }
  0x21   : > { %5405 = vmatprep.subr.bf16.mxu0 %v5404_v27  ;;  %v4623_v18 = vld [vmem:[%s6490_s23 + $0x8] sm:$0xff]  ;;  %v1656_v28 = vld [vmem:[%s6460_s8] sm:$0xff]  ;;  %v4645_v42 = vld [vmem:[%s6460_s8 + $0x58] sm:$0xff]  ;;  %s6493_s4 = sshll.u32 %s6495_s25, 4 }
  0x22   : > { %5423 = vmatpush3.bf16.msra.mxu1 %v5420_v15  ;;  %v4636_v15 = vld [vmem:[%s6460_s8 + $0x30] sm:$0xff]  ;;  %v1657_v29 = vld [vmem:[%s6460_s8 + $0x8] sm:$0xff]  ;;  %v4642_v35 = vld [vmem:[%s6460_s8 + $0x40] sm:$0xff] }
  0x23   : > { %5424 = vmatprep.subr.bf16.mxu1 %v5637_v20  ;;  %v2111_v48 = vld [vmem:[%s6461_s9 + $0x18] sm:$0xff]  ;;  %v4651_v2 = vld [vmem:[%s6461_s9 + $0x28] sm:$0xff] }
  0x24   : > { %5407 = vmatpush3.bf16.msra.mxu0 %v5404_v27  ;;  %v4647_v3 = vld [vmem:[%s6459_s7 + $0x8] sm:$0xf] }
  0x25   : > { %4990 = vmatmul.mubr.msk.f32.vlgmr.msra.gmra.mrb[0].mxu1 %vm724_vm0, %v713_v16  ;;  %5427 = vmatprep.subr.bf16.mxu0 %v5637_v20 }
  0x26   : > { %4996 = vmatprep.mubr.msk.f32.mxu1 %vm5638_vm1, %v5639_v24 }
  0x27   : > { %4971 = vmatmul.mubr.msk.f32.vlgmr.msra.gmra.mrb[0].mxu0 %vm724_vm0, %v713_v16 }
  0x28   : > { %5003 = vmatprep.mubr.msk.f32.mxu0 %vm5638_vm1, %v5639_v24 }
  0xf8   : > { %v4991_v30 = vpop.f32.mrb[0].mxu1 }
  0xf9   : > { %v882_v31 = vpop.f32.mrb[1].mxu1 }
  0xfa   : > { %v5425_v33 = vpack.c.bf16 %v4991_v30, %v882_v31  ;;  %v4972_v44 = vpop.f32.mrb[0].mxu0  ;;  %v4631_v30 = vld [vmem:[%s6490_s23 + $0x10] sm:$0xff]  ;;  %v5468_v31 = vpack.c.bf16 %v1657_v29, %v1656_v28  ;;  %v4674_v28 = vld [vmem:[%s6463_s11 + $0x40] sm:$0xff]  ;;  %v4675_v29 = vld [vmem:[%s6463_s11 + $0x48] sm:$0xff] }
  0xfb   : > { %v797_v45 = vpop.f32.mrb[1].mxu0 }
  0xfc   : > { %5426 = vmatpush3.bf16.msra.mxu1 %v5425_v33  ;;  %v5428_v46 = vpack.c.bf16 %v4972_v44, %v797_v45  ;;  %v1659_v33 = vld [vmem:[%s6460_s8 + $0x18] sm:$0xff]  ;;  %v2108_v44 = vld [vmem:[%s6461_s9] sm:$0xff]  ;;  %v2109_v45 = vld [vmem:[%s6461_s9 + $0x8] sm:$0xff] }
  0xfd   : > { %5431 = vmatprep.subr.bf16.mxu1 %v5430_v32 }
  0xfe   : > { %5429 = vmatpush3.bf16.msra.mxu0 %v5428_v46  ;;  %v5486_v46 = vpack.c.bf16 %v2109_v45, %v2108_v44  ;;  %v2625_v45 = vld [vmem:[%s6462_s10] sm:$0xf] }
  0xff   : > { %4997 = vmatmul.mubr.msk.f32.vlgmr.msra.gmra.mrb[2].mxu1 %vm893_vm2, %v4602_v36  ;;  %5446 = vmatprep.subr.bf16.mxu0 %v5637_v20  ;;  %v4643_v36 = vld [vmem:[%s6460_s8 + $0x48] sm:$0xff] }
 0x100   : > { %5433 = vmatpush3.bf16.msra.mxu1 %v5430_v32  ;;  %5022 = vmatprep.mubr.msk.f32.mxu1 %vm724_vm0, %v712_v14  ;;  %v5474_v14 = vpack.c.bf16 %v4635_v13, %v4634_v12  ;;  %v1658_v32 = vld [vmem:[%s6460_s8 + $0x10] sm:$0xff]  ;;  %v5480_v38 = vpack.c.bf16 %v4643_v36, %v4642_v35  ;;  %v2548_v12 = vld [vmem:[%s6463_s11] sm:$0xff]  ;;  %v2549_v13 = vld [vmem:[%s6463_s11 + $0x8] sm:$0xff] }
 0x101   : > { %5435 = vmatprep.subr.bf16.mxu1 %v5434_v37  ;;  %5004 = vmatmul.mubr.msk.f32.vlgmr.msra.gmra.mrb[2].mxu0 %vm893_vm2, %v806_v47  ;;  %v5471_v34 = vpack.c.bf16 %v1659_v33, %v1658_v32  ;;  %v2110_v47 = vld [vmem:[%s6461_s9 + $0x10] sm:$0xff]  ;;  %v4677_v35 = vld [vmem:[%s6463_s11 + $0x58] sm:$0xff] }
 0x102   : > { %5029 = vmatprep.mubr.msk.f32.mxu0 %vm5638_vm1, %v5639_v24  ;;  %v5489_v49 = vpack.c.bf16 %v2111_v48, %v2110_v47  ;;  %v3012_v48 = vld [vmem:[%s6465_s13] sm:$0xff] }
 0x104   : > { %5437 = vmatpush3.bf16.msra.mxu1 %v5434_v37 }
 0x105   : > { %5439 = vmatprep.subr.bf16.mxu1 %v5438_v40 }
 0x108   : > { %5441 = vmatpush3.bf16.msra.mxu1 %v5438_v40 }
 0x109   : > { %5443 = vmatprep.subr.bf16.mxu1 %v5442_v43 }
 0x10c   : > { %5445 = vmatpush3.bf16.msra.mxu1 %v5442_v43  ;;  %v5483_v43 = vpack.c.bf16 %v4645_v42, %v4644_v41 }
 0x10d   : > { %5455 = vmatprep.subr.bf16.mxu1 %v5637_v20 }
 0x10f   : > { %5023 = vmatmul.mubr.msk.f32.vlgmr.msra.gmra.mrb[4].mxu1 %vm724_vm0, %v713_v16  ;;  %v4637_v16 = vld [vmem:[%s6460_s8 + $0x38] sm:$0xff] }
 0x110   : > { %5051 = vmatprep.mubr.msk.f32.mxu1 %vm5638_vm1, %v5639_v24  ;;  %5457 = vmatpush3.bf16.msra.mxu1 %v5456_v50  ;;  %v5477_v17 = vpack.c.bf16 %v4637_v16, %v4636_v15  ;;  %v4657_v50 = vld [vmem:[%s6461_s9 + $0x40] sm:$0xff] }
 0x111   : > { %5458 = vmatprep.subr.bf16.mxu1 %v5637_v20 }
 0x114   : > { %5460 = vmatpush3.bf16.msra.mxu1 %v5459_v62  ;;  %v1733_v62 = vld [vmem:[%s6459_s7] sm:$0xf] }
 0x115   : > { %5461 = vmatprep.subr.bf16.mxu1 %v5637_v20 }
 0x1d2   : > { %v963_v51 = vpop.f32.mrb[2].mxu1 }
 0x1d3   : > { %v4998_v52 = vpop.f32.mrb[3].mxu1 }
 0x1e2   : > { %v5024_v53 = vpop.f32.mrb[4].mxu1 }
 0x1e3   : > { %v1115_v54 = vpop.f32.mrb[5].mxu1 }
 0x1e4   : > { %v5447_v57 = vpack.c.bf16 %v5024_v53, %v1115_v54  ;;  %v4659_v53 = vld [vmem:[%s6461_s9 + $0x50] sm:$0xff]  ;;  %v4660_v54 = vld [vmem:[%s6461_s9 + $0x58] sm:$0xff] }
 0x1e5   : > { %v5501_v56 = vpack.c.bf16 %v4660_v54, %v4659_v53  ;;  %v3015_v53 = vld [vmem:[%s6465_s13 + $0x18] sm:$0xff]  ;;  %v4685_v54 = vld [vmem:[%s6465_s13 + $0x30] sm:$0xff] }
 0x1e6   : > { %5448 = vmatpush3.bf16.msra.mxu0 %v5447_v57  ;;  %v4639_v57 = vld [vmem:[%s6459_s7 + $0x4] sm:$0xf] }
 0x1e7   : > { %5449 = vmatprep.subr.bf16.mxu0 %v5637_v20 }
 0x1e9   : > { %5030 = vmatmul.mubr.msk.f32.vlgmr.msra.gmra.mrb[2].mxu0 %vm893_vm2, %v4615_v58 }
 0x1ea   : > { %5451 = vmatpush3.bf16.msra.mxu0 %v5450_v59  ;;  %5040 = vmatprep.mubr.msk.f32.mxu0 %vm5638_vm1, %v5639_v24 }
 0x1eb   : > { %5452 = vmatprep.subr.bf16.mxu0 %v5637_v20 }
 0x1ee   : > { %5454 = vmatpush3.bf16.msra.mxu0 %v5453_v1  ;;  %v4650_v1 = vld [vmem:[%s6461_s9 + $0x20] sm:$0xff] }
 0x1ef   : > { %5054 = vmatprep.subr.mxu0 %v5639_v24 }
 0x2bc   : > { %v1195_v4 = vpop.f32.mrb[2].mxu0 }
 0x2bd   : > { %v5593_v5 = vadd.f32 %v1195_v4, %v963_v51  ;;  %v5031_v6 = vpop.f32.mrb[3].mxu0  ;;  %v4658_v51 = vld [vmem:[%s6461_s9 + $0x48] sm:$0xff]  ;;  %v5492_v4 = vpack.c.bf16 %v4651_v2, %v4650_v1 }
 0x2be   : > { %v5498_v52 = vpack.c.bf16 %v4658_v51, %v4657_v50  ;;  %v4653_v6 = vld [vmem:[%s6461_s9 + $0x38] sm:$0xff]  ;;  %v4679_v50 = vld [vmem:[%s6462_s10 + $0x8] sm:$0xf] }
 0x2bf   : > { %v1200_v8 = vmax.f32 %v5593_v5, 0.0  ;;  %v4652_v5 = vld [vmem:[%s6461_s9 + $0x30] sm:$0xff] }
 0x2c1   : > { %5041 = vmatmul.mubr.msk.f32.vlgmr.msra.gmra.mrb[4].mxu0 %vm1205_vm3, %v1200_v8  ;;  %5052 = vmatmul.mubr.msk.f32.vlgmr.msra.gmra.mrb[6].mxu1 %vm1205_vm3, %v1200_v8 }
 0x2c2   : > { %5463 = vmatpush3.bf16.msra.mxu1 %v5462_v7  ;;  %5072 = vmatprep.mubr.msk.f32.mxu1 %vm5638_vm1, %v5639_v24  ;;  %v5495_v7 = vpack.c.bf16 %v4653_v6, %v4652_v5  ;;  %v4696_v5 = vld [vmem:[%s6465_s13 + $0x58] sm:$0xff] }
 0x2c3   : > { %5464 = vmatprep.subr.bf16.mxu1 %v5637_v20  ;;  %5056 = vmatprep.mubr.msk.f32.mxu0 %vm5638_vm1, %v5639_v24 }
 0x2c6   : > { %5466 = vmatpush3.bf16.msra.mxu1 %v5465_v11 }
 0x2c7   : > { %5473 = vmatprep.subr.bf16.mxu1 %v5637_v20 }
 0x2c9   : > { %5073 = vmatmul.mubr.msk.f32.vlgmr.msra.gmra.mrb[8].mxu1 %vm1205_vm3, %v1200_v8 }
 0x2ca   : > { %5099 = vmatprep.mubr.msk.f32.mxu1 %vm5638_vm1, %v5639_v24  ;;  %5475 = vmatpush3.bf16.msra.mxu1 %v5474_v14  ;;  %v5504_v14 = vpack.c.bf16 %v2549_v13, %v2548_v12  ;;  %v4704_v12 = vld [vmem:[%s6466_s14 + $0x30] sm:$0xff]  ;;  %v4705_v13 = vld [vmem:[%s6466_s14 + $0x38] sm:$0xff] }
 0x2cb   : > { %5476 = vmatprep.subr.bf16.mxu1 %v5637_v20 }
 0x2ce   : > { %5478 = vmatpush3.bf16.msra.mxu1 %v5477_v17  ;;  %v4664_v17 = vld [vmem:[%s6463_s11 + $0x20] sm:$0xff] }
 0x2cf   : > { %5479 = vmatprep.subr.bf16.mxu1 %v5637_v20 }
 0x394   : > { %v1275_v19 = vpop.f32.mrb[4].mxu0  ;;  %v1351_v21 = vpop.f32.mrb[6].mxu1 }
 0x395   : > { %v5042_v22 = vpop.f32.mrb[5].mxu0  ;;  %v5053_v23 = vpop.f32.mrb[7].mxu1  ;;  %5055 = vmatpush3.msra.mxu0 %v1351_v21  ;;  %v4666_v21 = vld [vmem:[%s6463_s11 + $0x30] sm:$0xff] }
 0x396   : > { %5057 = vmatmul.mubr.msk.f32.vlgmr.msra.gmra.mrb[6].mxu0 %vm1357_vm4, %v4623_v18  ;;  %5059 = vmatprep.subr.mxu0 %v5639_v24  ;;  %v4665_v18 = vld [vmem:[%s6463_s11 + $0x28] sm:$0xff]  ;;  %v4667_v22 = vld [vmem:[%s6463_s11 + $0x38] sm:$0xff] }
 0x397   : > { %5060 = vmatpush3.msra.mxu0 %v1275_v19  ;;  %5061 = vmatprep.mubr.msk.f32.mxu0 %vm5638_vm1, %v5639_v24  ;;  %v5510_v19 = vpack.c.bf16 %v4665_v18, %v4664_v17  ;;  %v5513_v23 = vpack.c.bf16 %v4667_v22, %v4666_v21  ;;  %v3473_v22 = vld [vmem:[%s6466_s14] sm:$0xff] }
 0x398   : > { %5075 = vmatprep.subr.mxu0 %v5639_v24 }
 0x39c   : > { %v1575_v26 = vpop.f32.mrb[8].mxu1 }
 0x39d   : > { %v5074_v27 = vpop.f32.mrb[9].mxu1 }
 0x39e   : > { %5062 = vmatmul.mubr.msk.f32.vlgmr.msra.gmra.mrb[6].mxu0 %vm1357_vm4, %v1279_v25  ;;  %v2550_v25 = vld [vmem:[%s6463_s11 + $0x10] sm:$0xff] }
 0x39f   : > { %5076 = vmatpush3.msra.mxu0 %v1575_v26  ;;  %5077 = vmatprep.mubr.msk.f32.mxu0 %vm5638_vm1, %v5639_v24  ;;  %v2551_v26 = vld [vmem:[%s6463_s11 + $0x18] sm:$0xff] }
 0x3a0   : > { %5467 = vmatprep.subr.bf16.mxu0 %v5637_v20  ;;  %v5507_v27 = vpack.c.bf16 %v2551_v26, %v2550_v25  ;;  %v4698_v25 = vld [vmem:[%s6464_s12 + $0x10] sm:$0xff] }
 0x3a6   : > { %5078 = vmatmul.mubr.msk.f32.vlgmr.msra.gmra.mrb[6].mxu0 %vm1357_vm4, %v4631_v30 }
 0x3a7   : > { %5469 = vmatpush3.bf16.msra.mxu0 %v5468_v31  ;;  %5088 = vmatprep.mubr.msk.f32.mxu0 %vm5638_vm1, %v5639_v24  ;;  %v5516_v31 = vpack.c.bf16 %v4675_v29, %v4674_v28  ;;  %v3475_v28 = vld [vmem:[%s6466_s14 + $0x10] sm:$0xff]  ;;  %v3476_v29 = vld [vmem:[%s6466_s14 + $0x18] sm:$0xff] }
 0x3a8   : > { %5470 = vmatprep.subr.bf16.mxu0 %v5637_v20 }
 0x3ab   : > { %5472 = vmatpush3.bf16.msra.mxu0 %v5471_v34  ;;  %v4676_v34 = vld [vmem:[%s6463_s11 + $0x50] sm:$0xff] }
 0x3ac   : > { %5102 = vmatprep.subr.mxu0 %v5639_v24  ;;  %v5519_v36 = vpack.c.bf16 %v4677_v35, %v4676_v34  ;;  %v4712_v34 = vld [vmem:[%s6466_s14 + $0x48] sm:$0xff] }
 0x479   : > { %v1650_v37 = vpop.f32.mrb[6].mxu0 }
 0x47a   : > { %v1655_v39 = vmax.f32 %v1650_v37, 0.0  ;;  %v5079_v40 = vpop.f32.mrb[7].mxu0  ;;  %v4683_v37 = vld [vmem:[%s6465_s13 + $0x20] sm:$0xff] }
 0x47b   : > { %v4669_v40 = vld [vmem:[%s6462_s10 + $0x4] sm:$0xf] }
 0x47c   : > { %5089 = vmatmul.mubr.msk.f32.vlgmr.msra.gmra.mrb[8].mxu0 %vm1205_vm3, %v1655_v39  ;;  %5100 = vmatmul.mubr.msk.f32.vlgmr.msra.gmra.mrb[10].mxu1 %vm1205_vm3, %v1655_v39  ;;  %4433 = vst.msk [vmem:[%s707_s24] sm:$0xff] %vm1205_vm3, %v1655_v39  ;;  %s694_s24 = scalar_lea.vmem %s6491_s1, %s4584_s5  ;;  %s703_s1 = scalar_lea.vmem %s6471_s19, %s6493_s4 }
 0x47d   : > { %5481 = vmatpush3.bf16.msra.mxu1 %v5480_v38  ;;  %5120 = vmatprep.mubr.msk.f32.mxu1 %vm5638_vm1, %v5639_v24  ;;  %v714_v55 = vld [vmem:[%s694_s24] sm:$0xff]  ;;  %v4684_v38 = vld [vmem:[%s6465_s13 + $0x28] sm:$0xff] }
 0x47e   : > { %5482 = vmatprep.subr.bf16.mxu1 %v5637_v20  ;;  %5104 = vmatprep.mubr.msk.f32.mxu0 %vm5638_vm1, %v5639_v24 }
 0x481   : > { %5484 = vmatpush3.bf16.msra.mxu1 %v5483_v43 }
 0x482   : > { %5485 = vmatprep.subr.bf16.mxu1 %v5637_v20 }
 0x484   : > { %5121 = vmatmul.mubr.msk.f32.vlgmr.msra.gmra.mrb[12].mxu1 %vm1205_vm3, %v1655_v39  ;;  %v5528_v39 = vpack.c.bf16 %v4684_v38, %v4683_v37  ;;  %v4713_v37 = vld [vmem:[%s6466_s14 + $0x50] sm:$0xff]  ;;  %v4714_v38 = vld [vmem:[%s6466_s14 + $0x58] sm:$0xff] }
 0x485   : > { %5136 = vmatprep.mubr.msk.f32.mxu1 %vm5638_vm1, %v5639_v24  ;;  %5487 = vmatpush3.bf16.msra.mxu1 %v5486_v46 }
 0x486   : > { %5488 = vmatprep.subr.bf16.mxu1 %v5637_v20 }
 0x489   : > { %5490 = vmatpush3.bf16.msra.mxu1 %v5489_v49  ;;  %v3013_v49 = vld [vmem:[%s6465_s13 + $0x8] sm:$0xff] }
 0x48a   : > { %5497 = vmatprep.subr.bf16.mxu1 %v5637_v20  ;;  %v5522_v51 = vpack.c.bf16 %v3013_v49, %v3012_v48  ;;  %v4720_v49 = vld [vmem:[%s6469_s17 + $0x40] sm:$0xff] }
 0x48c   : > { %5137 = vmatmul.mubr.msk.f32.vlgmr.msra.gmra.mrb[14].mxu1 %vm1205_vm3, %v714_v55 }
 0x48d   : > { %5499 = vmatpush3.bf16.msra.mxu1 %v5498_v52  ;;  %5168 = vmatprep.mubr.msk.f32.mxu1 %vm5638_vm1, %v5639_v24  ;;  %v3014_v52 = vld [vmem:[%s6465_s13 + $0x10] sm:$0xff] }
 0x48e   : > { %5500 = vmatprep.subr.bf16.mxu1 %v5637_v20 }
 0x491   : > { %5502 = vmatpush3.bf16.msra.mxu1 %v5501_v56  ;;  %v4686_v56 = vld [vmem:[%s6465_s13 + $0x38] sm:$0xff] }
 0x492   : > { %5503 = vmatprep.subr.bf16.mxu1 %v5637_v20 }
 0x494   : > { %5169 = vmatmul.mubr.msk.f32.vlgmr.msra.gmra.mrb[16].mxu1 %vm1205_vm3, %v714_v55 }
 0x495   : > { %5184 = vmatprep.mubr.msk.f32.mxu1 %vm5638_vm1, %v5639_v24  ;;  %5505 = vmatpush3.bf16.msra.mxu1 %v5504_v14  ;;  %v5549_v14 = vpack.c.bf16 %v4705_v13, %v4704_v12 }
 0x496   : > { %5506 = vmatprep.subr.bf16.mxu1 %v5637_v20 }
 0x499   : > { %5508 = vmatpush3.bf16.msra.mxu1 %v5507_v27 }
 0x49a   : > { %5198 = vmatprep.subr.mxu1 %v5639_v24 }
 0x54f   : > { %v1729_v58 = vpop.f32.mrb[8].mxu0  ;;  %v1805_v59 = vpop.f32.mrb[10].mxu1 }
 0x550   : > { %v5090_v60 = vpop.f32.mrb[9].mxu0  ;;  %v5101_v61 = vpop.f32.mrb[11].mxu1  ;;  %5103 = vmatpush3.msra.mxu0 %v1805_v59 }
 0x551   : > { %5105 = vmatmul.mubr.msk.f32.vlgmr.msra.gmra.mrb[10].mxu0 %vm1357_vm4, %v4639_v57  ;;  %5107 = vmatprep.subr.mxu0 %v5639_v24  ;;  %v4693_v61 = vld [vmem:[%s6465_s13 + $0x40] sm:$0xff] }
 0x552   : > { %5108 = vmatpush3.msra.mxu0 %v1729_v58  ;;  %5109 = vmatprep.mubr.msk.f32.mxu0 %vm5638_vm1, %v5639_v24 }
 0x553   : > { %5123 = vmatprep.subr.mxu0 %v5639_v24 }
 0x557   : > { %v2028_v63 = vpop.f32.mrb[12].mxu1 }
 0x558   : > { %v5122_v0 = vpop.f32.mrb[13].mxu1 }
 0x559   : > { %5110 = vmatmul.mubr.msk.f32.vlgmr.msra.gmra.mrb[10].mxu0 %vm1357_vm4, %v1733_v62 }
 0x55a   : > { %5124 = vmatpush3.msra.mxu0 %v2028_v63  ;;  %5125 = vmatprep.mubr.msk.f32.mxu0 %vm5638_vm1, %v5639_v24  ;;  %v6214_v63 = vld [vmem:[%s6464_s12 + $0x8] sm:$0xff] }
 0x55b   : > { %5491 = vmatprep.subr.bf16.mxu0 %v5637_v20 }
 0x55f   : > { %v2181_v8 = vpop.f32.mrb[14].mxu1 }
 0x560   : > { %v5138_v9 = vpop.f32.mrb[15].mxu1 }
 0x561   : > { %5126 = vmatmul.mubr.msk.f32.vlgmr.msra.gmra.mrb[10].mxu0 %vm1357_vm4, %v4647_v3  ;;  %v4702_v9 = vld [vmem:[%s6466_s14 + $0x20] sm:$0xff] }
 0x562   : > { %5493 = vmatpush3.bf16.msra.mxu0 %v5492_v4  ;;  %5147 = vmatprep.mubr.msk.f32.mxu0 %vm5638_vm1, %v5639_v24  ;;  %v4695_v4 = vld [vmem:[%s6465_s13 + $0x50] sm:$0xff] }
 0x563   : > { %5494 = vmatprep.subr.bf16.mxu0 %v5637_v20 }
 0x566   : > { %5496 = vmatpush3.bf16.msra.mxu0 %v5495_v7 }
 0x567   : > { %5150 = vmatprep.subr.mxu0 %v5639_v24  ;;  %v2471_v10 = vpop.f32.mrb[16].mxu1 }
 0x568   : > { %v5170_v11 = vpop.f32.mrb[17].mxu1 }
 0x569   : > { %5148 = vmatmul.mubr.msk.f32.vlgmr.msra.gmra.mrb[12].mxu0 %vm1205_vm3, %v714_v55  ;;  %v5525_v55 = vpack.c.bf16 %v3015_v53, %v3014_v52  ;;  %v3931_v53 = vld [vmem:[%s6469_s17 + $0x8] sm:$0xff] }
 0x56a   : > { %5152 = vmatprep.mubr.msk.f32.mxu0 %vm5638_vm1, %v5639_v24 }
 0x63c   : > { %v2256_v15 = vpop.f32.mrb[12].mxu0 }
 0x63d   : > { %v5149_v16 = vpop.f32.mrb[13].mxu0  ;;  %5151 = vmatpush3.msra.mxu0 %v2256_v15  ;;  %v715_v15 = vld [vmem:[%s698_s30] sm:$0xf] }
 0x63e   : > { %5153 = vmatmul.mubr.msk.f32.vlgmr.msra.gmra.mrb[10].mxu0 %vm1357_vm4, %v4639_v57  ;;  %5155 = vmatprep.subr.mxu0 %v5639_v24  ;;  %v5531_v57 = vpack.c.bf16 %v4686_v56, %v4685_v54  ;;  %v4722_v54 = vld [vmem:[%s6469_s17 + $0x50] sm:$0xff] }
 0x63f   : > { %5156 = vmatpush3.msra.mxu0 %v2181_v8  ;;  %5157 = vmatprep.mubr.msk.f32.mxu0 %vm5638_vm1, %v5639_v24  ;;  %v5537_v8 = vpack.c.bf16 %v4696_v5, %v4695_v4  ;;  %v4727_v4 = vld [vmem:[%s6469_s17 + $0x78] sm:$0xff] }
 0x640   : > { %5171 = vmatprep.subr.mxu0 %v5639_v24 }
 0x646   : > { %5158 = vmatmul.mubr.msk.f32.vlgmr.msra.gmra.mrb[10].mxu0 %vm1357_vm4, %v1733_v62  ;;  %v4694_v62 = vld [vmem:[%s6465_s13 + $0x48] sm:$0xff] }
 0x647   : > { %5172 = vmatpush3.msra.mxu0 %v2471_v10  ;;  %5173 = vmatprep.mubr.msk.f32.mxu0 %vm5638_vm1, %v5639_v24  ;;  %v5534_v0 = vpack.c.bf16 %v4694_v62, %v4693_v61  ;;  %v4703_v10 = vld [vmem:[%s6466_s14 + $0x28] sm:$0xff]  ;;  %v4724_v61 = vld [vmem:[%s6469_s17 + $0x60] sm:$0xff] }
 0x648   : > { %5509 = vmatprep.subr.bf16.mxu0 %v5637_v20  ;;  %v5546_v11 = vpack.c.bf16 %v4703_v10, %v4702_v9  ;;  %v4725_v62 = vld [vmem:[%s6469_s17 + $0x68] sm:$0xff] }
 0x64e   : > { %5174 = vmatmul.mubr.msk.f32.vlgmr.msra.gmra.mrb[10].mxu0 %vm1357_vm4, %v4647_v3  ;;  %v6219_v3 = vld [vmem:[%s6464_s12] sm:$0xff] }
 0x64f   : > { %5511 = vmatpush3.bf16.msra.mxu0 %v5510_v19  ;;  %5195 = vmatprep.mubr.msk.f32.mxu0 %vm5638_vm1, %v5639_v24 }
 0x650   : > { %5512 = vmatprep.subr.bf16.mxu0 %v5637_v20 }
 0x653   : > { %5514 = vmatpush3.bf16.msra.mxu0 %v5513_v23  ;;  %v3474_v23 = vld [vmem:[%s6466_s14 + $0x8] sm:$0xff] }
 0x654   : > { %5515 = vmatprep.subr.bf16.mxu0 %v5637_v20  ;;  %v5540_v26 = vpack.c.bf16 %v3474_v23, %v3473_v22  ;;  %v4737_v23 = vld [vmem:[%s6469_s17 + $0x90] sm:$0xff] }
 0x721   : > { %v2541_v30 = vpop.f32.mrb[10].mxu0 }
 0x722   : > { %v2547_v32 = vmax.f32 %v2541_v30, 0.0  ;;  %v5175_v33 = vpop.f32.mrb[11].mxu0 }
 0x723   : > { %v4711_v33 = vld [vmem:[%s6466_s14 + $0x40] sm:$0xff] }
 0x724   : > { %5185 = vmatmul.mubr.msk.f32.vlgmr.msra.gmra.mrb[18].mxu1 %vm1205_vm3, %v2547_v32  ;;  %5196 = vmatmul.mubr.msk.f32.vlgmr.msra.gmra.mrb[14].mxu0 %vm1205_vm3, %v2547_v32 }
 0x725   : > { %5517 = vmatpush3.bf16.msra.mxu0 %v5516_v31  ;;  %5216 = vmatprep.mubr.msk.f32.mxu0 %vm5638_vm1, %v5639_v24  ;;  %v5543_v31 = vpack.c.bf16 %v3476_v29, %v3475_v28  ;;  %v4740_v28 = vld [vmem:[%s6469_s17 + $0xa8] sm:$0xff] }
 0x726   : > { %5518 = vmatprep.subr.bf16.mxu0 %v5637_v20  ;;  %5200 = vmatprep.mubr.msk.f32.mxu1 %vm5638_vm1, %v5639_v24 }
 0x729   : > { %5520 = vmatpush3.bf16.msra.mxu0 %v5519_v36  ;;  %v5552_v36 = vpack.c.bf16 %v4712_v34, %v4711_v33 }
 0x72a   : > { %5527 = vmatprep.subr.bf16.mxu0 %v5637_v20 }
 0x72c   : > { %5217 = vmatmul.mubr.msk.f32.vlgmr.msra.gmra.mrb[16].mxu0 %vm1205_vm3, %v2547_v32 }
 0x72d   : > { %5243 = vmatprep.mubr.msk.f32.mxu0 %vm5638_vm1, %v5639_v24  ;;  %5529 = vmatpush3.bf16.msra.mxu0 %v5528_v39  ;;  %v5555_v39 = vpack.c.bf16 %v4714_v38, %v4713_v37  ;;  %v4012_v38 = vld [vmem:[%s6468_s16 + $0x8] sm:$0xff] }
 0x72e   : > { %5530 = vmatprep.subr.bf16.mxu0 %v5637_v20 }
 0x731   : > { %5532 = vmatpush3.bf16.msra.mxu0 %v5531_v57  ;;  %v3932_v57 = vld [vmem:[%s6469_s17 + $0x10] sm:$0xff] }
 0x732   : > { %5251 = vmatprep.subr.mxu0 %v5639_v24 }
 0x7f7   : > { %v2621_v41 = vpop.f32.mrb[18].mxu1  ;;  %v2697_v42 = vpop.f32.mrb[14].mxu0 }
 0x7f8   : > { %v5186_v43 = vpop.f32.mrb[19].mxu1  ;;  %v5197_v44 = vpop.f32.mrb[15].mxu0  ;;  %5199 = vmatpush3.msk.msra.mxu1 %vm2707_vm5, %v2697_v42 }
 0x7f9   : > { %5201 = vmatmul.mubr.msk.f32.vlgmr.msra.gmra.mrb[20].mxu1 %vm2703_vm6, %v4669_v40  ;;  %5203 = vmatprep.subr.mxu1 %v5639_v24 }
 0x7fa   : > { %5204 = vmatpush3.msk.msra.mxu1 %vm2707_vm5, %v2621_v41  ;;  %5205 = vmatprep.mubr.msk.f32.mxu1 %vm5638_vm1, %v5639_v24 }
 0x7fb   : > { %5219 = vmatprep.subr.mxu1 %v5639_v24 }
 0x7ff   : > { %v2928_v46 = vpop.f32.mrb[16].mxu0 }
 0x800   : > { %v5218_v47 = vpop.f32.mrb[17].mxu0 }
 0x801   : > { %5206 = vmatmul.mubr.msk.f32.vlgmr.msra.gmra.mrb[20].mxu1 %vm2703_vm6, %v2625_v45 }
 0x802   : > { %5220 = vmatpush3.msk.msra.mxu1 %vm2707_vm5, %v2928_v46  ;;  %5221 = vmatprep.mubr.msk.f32.mxu1 %vm5638_vm1, %v5639_v24 }
 0x803   : > { %5521 = vmatprep.subr.bf16.mxu1 %v5637_v20 }
 0x809   : > { %5222 = vmatmul.mubr.msk.f32.vlgmr.msra.gmra.mrb[20].mxu1 %vm2703_vm6, %v4679_v50  ;;  %v4721_v50 = vld [vmem:[%s6469_s17 + $0x48] sm:$0xff] }
 0x80a   : > { %5523 = vmatpush3.bf16.msra.mxu1 %v5522_v51  ;;  %5232 = vmatprep.mubr.msk.f32.mxu1 %vm5638_vm1, %v5639_v24  ;;  %v3930_v51 = vld [vmem:[%s6469_s17] sm:$0xff]  ;;  %v5570_v52 = vpack.c.bf16 %v4721_v50, %v4720_v49 }
 0x80b   : > { %5524 = vmatprep.subr.bf16.mxu1 %v5637_v20  ;;  %v5558_v56 = vpack.c.bf16 %v3931_v53, %v3930_v51 }
 0x80e   : > { %5526 = vmatpush3.bf16.msra.mxu1 %v5525_v55  ;;  %v4723_v55 = vld [vmem:[%s6469_s17 + $0x58] sm:$0xff] }
 0x80f   : > { %5246 = vmatprep.subr.mxu1 %v5639_v24 }
 0x8dc   : > { %v3006_v58 = vpop.f32.mrb[20].mxu1 }
 0x8dd   : > { %v3011_v59 = vmax.f32 %v3006_v58, 0.0  ;;  %v5223_v60 = vpop.f32.mrb[21].mxu1  ;;  %v3933_v58 = vld [vmem:[%s6469_s17 + $0x18] sm:$0xff] }
 0x8de   : > { %v5561_v60 = vpack.c.bf16 %v3933_v58, %v3932_v57 }
 0x8df   : > { %5233 = vmatmul.mubr.msk.f32.vlgmr.msra.gmra.mrb[22].mxu1 %vm1205_vm3, %v3011_v59  ;;  %5244 = vmatmul.mubr.msk.f32.vlgmr.msra.gmra.mrb[18].mxu0 %vm1205_vm3, %v3011_v59  ;;  %4435 = vst.msk [vmem:[%s711_s0] sm:$0xf] %vm4434_vm7, %v3011_v59 }
 0x8e0   : > { %5248 = vmatprep.mubr.msk.f32.mxu1 %vm5638_vm1, %v5639_v24  ;;  %5253 = vmatprep.mubr.msk.f32.mxu0 %vm5638_vm1, %v5639_v24 }
 0x9b2   : > { %v3085_v1 = vpop.f32.mrb[22].mxu1  ;;  %v3161_v2 = vpop.f32.mrb[18].mxu0 }
 0x9b3   : > { %v5234_v6 = vpop.f32.mrb[23].mxu1  ;;  %v5245_v7 = vpop.f32.mrb[19].mxu0  ;;  %5247 = vmatpush3.msk.msra.mxu1 %vm2707_vm5, %v3161_v2  ;;  %5252 = vmatpush3.msk.msra.mxu0 %vm2707_vm5, %v3085_v1  ;;  %v3935_v1 = vld [vmem:[%s6469_s17 + $0x28] sm:$0xff] }
 0x9b4   : > { %5249 = vmatmul.mubr.msk.f32.vlgmr.msra.gmra.mrb[24].mxu1 %vm2703_vm6, %v6214_v63  ;;  %5533 = vmatprep.subr.bf16.mxu1 %v5637_v20  ;;  %v3936_v6 = vld [vmem:[%s6469_s17 + $0x30] sm:$0xff]  ;;  %v3937_v7 = vld [vmem:[%s6469_s17 + $0x38] sm:$0xff] }
 0x9b5   : > { %5254 = vmatmul.mubr.msk.f32.vlgmr.msra.gmra.mrb[20].mxu0 %vm2703_vm6, %v6219_v3  ;;  %5535 = vmatpush3.bf16.msra.mxu1 %v5534_v0  ;;  %v3934_v0 = vld [vmem:[%s6469_s17 + $0x20] sm:$0xff] }
 0x9b6   : > { %5536 = vmatprep.subr.bf16.mxu1 %v5637_v20  ;;  %5264 = vmatprep.mubr.msk.f32.mxu1 %vm5638_vm1, %v5639_v24  ;;  %v5564_v2 = vpack.c.bf16 %v3935_v1, %v3934_v0 }
 0x9b7   : > { %5267 = vmatprep.subr.mxu0 %v5639_v24  ;;  %5269 = vmatprep.mubr.msk.f32.mxu0 %vm5638_vm1, %v5639_v24 }
 0x9b9   : > { %5538 = vmatpush3.bf16.msra.mxu1 %v5537_v8  ;;  %v5567_v8 = vpack.c.bf16 %v3937_v7, %v3936_v6 }
 0x9ba   : > { %5545 = vmatprep.subr.bf16.mxu1 %v5637_v20 }
 0x9bc   : > { %5265 = vmatmul.mubr.msk.f32.vlgmr.msra.gmra.mrb[26].mxu1 %vm1205_vm3, %v3011_v59  ;;  %v5573_v59 = vpack.c.bf16 %v4723_v55, %v4722_v54 }
 0x9bd   : > { %5547 = vmatpush3.bf16.msra.mxu1 %v5546_v11  ;;  %5291 = vmatprep.mubr.msk.f32.mxu1 %vm5638_vm1, %v5639_v24 }
 0x9be   : > { %5548 = vmatprep.subr.bf16.mxu1 %v5637_v20 }
 0x9c1   : > { %5550 = vmatpush3.bf16.msra.mxu1 %v5549_v14 }
 0x9c2   : > { %5299 = vmatprep.subr.mxu1 %v5639_v24 }
 0x9c4   : > { %5292 = vmatmul.mubr.msk.f32.vlgmr.msra.gmra.mrb[28].mxu1 %vm1205_vm3, %v715_v15 }
 0x9c5   : > { %5301 = vmatprep.mubr.msk.f32.mxu1 %vm5638_vm1, %v5639_v24 }
 0xa87   : > { %v3239_v16 = vpop.f32.mrb[24].mxu1 }
 0xa88   : > { %v5250_v17 = vpop.f32.mrb[25].mxu1  ;;  %v3315_v18 = vpop.f32.mrb[20].mxu0 }
 0xa89   : > { %v3316_v19 = vadd.f32 %v3315_v18, %v3239_v16  ;;  %v5255_v21 = vpop.f32.mrb[21].mxu0  ;;  %v4735_v17 = vld [vmem:[%s6469_s17 + $0x80] sm:$0xff]  ;;  %v4736_v18 = vld [vmem:[%s6469_s17 + $0x88] sm:$0xff] }
 0xa8a   : > { %v5582_v21 = vpack.c.bf16 %v4736_v18, %v4735_v17 }
 0xa8f   : > { %v3390_v27 = vpop.f32.mrb[26].mxu1 }
 0xa90   : > { %v5266_v30 = vpop.f32.mrb[27].mxu1  ;;  %5268 = vmatpush3.msk.msra.mxu0 %vm2707_vm5, %v3390_v27  ;;  %v4739_v27 = vld [vmem:[%s6469_s17 + $0xa0] sm:$0xff] }
 0xa91   : > { %5270 = vmatmul.mubr.msk.f32.vlgmr.msra.gmra.mrb[22].mxu0 %vm2703_vm6, %v4698_v25  ;;  %5539 = vmatprep.subr.bf16.mxu0 %v5637_v20  ;;  %v5588_v29 = vpack.c.bf16 %v4740_v28, %v4739_v27  ;;  %v4741_v30 = vld [vmem:[%s6469_s17 + $0xb0] sm:$0xff] }
 0xa92   : > { %5541 = vmatpush3.bf16.msra.mxu0 %v5540_v26  ;;  %5280 = vmatprep.mubr.msk.f32.mxu0 %vm5638_vm1, %v5639_v24 }
 0xa93   : > { %5542 = vmatprep.subr.bf16.mxu0 %v5637_v20 }
 0xa96   : > { %5544 = vmatpush3.bf16.msra.mxu0 %v5543_v31 }
 0xa97   : > { %v3621_v32 = vpop.f32.mrb[28].mxu1  ;;  %5294 = vmatprep.subr.mxu0 %v5639_v24 }
 0xa98   : > { %v5293_v35 = vpop.f32.mrb[29].mxu1 }
 0xa99   : > { %5281 = vmatmul.mubr.msk.f32.vlgmr.msra.gmra.mrb[24].mxu0 %vm1205_vm3, %v715_v15  ;;  %v4730_v35 = vld [vmem:[%s6468_s16 + $0x18] sm:$0xff] }
 0xa9a   : > { %5295 = vmatpush3.msk.msra.mxu0 %vm2707_vm5, %v3621_v32  ;;  %5296 = vmatprep.mubr.msk.f32.mxu0 %vm5638_vm1, %v5639_v24  ;;  %v4729_v32 = vld [vmem:[%s6468_s16 + $0x10] sm:$0xff] }
 0xa9b   : > { %5551 = vmatprep.subr.bf16.mxu0 %v5637_v20 }
 0xa9d   : > { %5297 = vmatmul.mubr.msk.f32.vlgmr.msra.gmra.mrb[26].mxu0 %vm2703_vm6, %v6214_v63  ;;  %v5576_v63 = vpack.c.bf16 %v4725_v62, %v4724_v61 }
 0xa9e   : > { %5553 = vmatpush3.bf16.msra.mxu0 %v5552_v36  ;;  %5312 = vmatprep.mubr.msk.f32.mxu0 %vm5638_vm1, %v5639_v24 }
 0xa9f   : > { %5554 = vmatprep.subr.bf16.mxu0 %v5637_v20 }
 0xaa2   : > { %5556 = vmatpush3.bf16.msra.mxu0 %v5555_v39  ;;  %v4744_v39 = vld [vmem:[%s6468_s16 + $0x20] sm:$0xff] }
 0xaa3   : > { %5569 = vmatprep.subr.bf16.mxu0 %v5637_v20 }
 0xaa5   : > { %5313 = vmatmul.mubr.msk.f32.vlgmr.msra.gmra.mrb[28].mxu0 %vm1205_vm3, %v715_v15  ;;  %v4718_v15 = vld [vmem:[%s6467_s15] ss:$0 sm:$0xff] }
 0xaa6   : > { %5355 = vmatprep.mubr.msk.f32.mxu0 %vm5638_vm1, %v5639_v24  ;;  %5571 = vmatpush3.bf16.msra.mxu0 %v5570_v52 }
 0xaa7   : > { %5572 = vmatprep.subr.bf16.mxu0 %v5637_v20 }
 0xaaa   : > { %5574 = vmatpush3.bf16.msra.mxu0 %v5573_v59 }
 0xaab   : > { %5575 = vmatprep.subr.bf16.mxu0 %v5637_v20 }
 0xaae   : > { %5577 = vmatpush3.bf16.msra.mxu0 %v5576_v63 }
 0xaaf   : > { %5578 = vmatprep.subr.bf16.mxu0 %v5637_v20 }
 0xb64   : > { %v3468_v40 = vpop.f32.mrb[22].mxu0 }
 0xb65   : > { %v3472_v41 = vadd.f32 %v3468_v40, %v3316_v19  ;;  %v5271_v42 = vpop.f32.mrb[23].mxu0 }
 0xb6c   : > { %v3546_v43 = vpop.f32.mrb[24].mxu0 }
 0xb6d   : > { %v5282_v44 = vpop.f32.mrb[25].mxu0  ;;  %5300 = vmatpush3.msk.msra.mxu1 %vm2707_vm5, %v3546_v43  ;;  %v4748_v43 = vld [vmem:[%s6470_s18] ss:$0 sm:$0xff] }
 0xb6e   : > { %5302 = vmatmul.mubr.msk.f32.vlgmr.msra.gmra.mrb[30].mxu1 %vm2703_vm6, %v6219_v3  ;;  %5315 = vmatprep.subr.mxu1 %v5639_v24  ;;  %v4726_v3 = vld [vmem:[%s6469_s17 + $0x70] sm:$0xff] }
 0xb6f   : > { %5317 = vmatprep.mubr.msk.f32.mxu1 %vm5638_vm1, %v5639_v24  ;;  %v5579_v5 = vpack.c.bf16 %v4727_v4, %v4726_v3 }
 0xb70   : > { %v3694_v45 = vpop.f32.mrb[26].mxu0 }
 0xb71   : > { %v5298_v46 = vpop.f32.mrb[27].mxu0  ;;  %5580 = vmatpush3.bf16.msra.mxu0 %v5579_v5 }
 0xb72   : > { %5581 = vmatprep.subr.bf16.mxu0 %v5637_v20 }
 0xb78   : > { %v3842_v47 = vpop.f32.mrb[28].mxu0 }
 0xb79   : > { %v5314_v48 = vpop.f32.mrb[29].mxu0  ;;  %5316 = vmatpush3.msk.msra.mxu1 %vm2707_vm5, %v3842_v47 }
 0xb7a   : > { %5318 = vmatmul.mubr.msk.f32.vlgmr.msra.gmra.mrb[32].mxu1 %vm2703_vm6, %v4698_v25  ;;  %5557 = vmatprep.subr.bf16.mxu1 %v5637_v20  ;;  %v4738_v25 = vld [vmem:[%s6469_s17 + $0x98] sm:$0xff] }
 0xb7b   : > { %5336 = vmatprep.mubr.msk.f32.mxu1 %vm5638_vm1, %v5639_v24  ;;  %5559 = vmatpush3.bf16.msra.mxu1 %v5558_v56  ;;  %v5585_v26 = vpack.c.bf16 %v4738_v25, %v4737_v23 }
 0xb7c   : > { %5560 = vmatprep.subr.bf16.mxu1 %v5637_v20 }
 0xb7f   : > { %5562 = vmatpush3.bf16.msra.mxu1 %v5561_v60 }
 0xb80   : > { %5563 = vmatprep.subr.bf16.mxu1 %v5637_v20 }
 0xb83   : > { %5565 = vmatpush3.bf16.msra.mxu1 %v5564_v2 }
 0xb84   : > { %5566 = vmatprep.subr.bf16.mxu1 %v5637_v20 }
 0xb87   : > { %5568 = vmatpush3.bf16.msra.mxu1 %v5567_v8 }
 0xc41   : > { %v3767_v9 = vpop.f32.mrb[30].mxu1 }
 0xc42   : > { %v3768_v10 = vadd.f32 %v3767_v9, %v3694_v45  ;;  %v5303_v11 = vpop.f32.mrb[31].mxu1 }
 0xc4d   : > { %v3915_v12 = vpop.f32.mrb[32].mxu1 }
 0xc4e   : > { %v3919_v13 = vadd.f32 %v3915_v12, %v3768_v10  ;;  %v5319_v14 = vpop.f32.mrb[33].mxu1 }
 0xc50   : > { %v3920_v16 = vadd.f32 %v3919_v13, %v3472_v41  ;;  %v4745_v41 = vld [vmem:[%s6468_s16 + $0x28] sm:$0xff] }
 0xc52   : > { %v3928_v19 = vadd.f32 %v4718_v15, %v3920_v16 }
 0xc54   : > { %v3929_v22 = vmax.f32 %v3928_v19, 0.0 }
 0xc56   : > { %5337 = vmatmul.mubr.msk.f32.vlgmr.msra.gmra.mrb[34].mxu1 %vm724_vm0, %v3929_v22  ;;  %5356 = vmatmul.mubr.msk.f32.vlgmr.msra.gmra.mrb[30].mxu0 %vm724_vm0, %v3929_v22 }
 0xc57   : > { %5583 = vmatpush3.bf16.msra.mxu0 %v5582_v21  ;;  %5384 = vmatprep.mubr.msk.f32.mxu0 %vm5638_vm1, %v5639_v24  ;;  %v4742_v24 = vld [vmem:[%s6469_s17 + $0xb8] sm:$0xff] }
 0xc58   : > { %5584 = vmatprep.subr.bf16.mxu0 %v5637_v20  ;;  %v5591_v31 = vpack.c.bf16 %v4742_v24, %v4741_v30  ;;  %5360 = vmatprep.mubr.msk.f32.mxu1 %vm1357_vm4, %v4729_v32 }
 0xc5b   : > { %5586 = vmatpush3.bf16.msra.mxu0 %v5585_v26 }
 0xc5c   : > { %5587 = vmatprep.subr.bf16.mxu0 %v5637_v20 }
 0xc5f   : > { %5589 = vmatpush3.bf16.msra.mxu0 %v5588_v29 }
 0xc60   : > { %5590 = vmatprep.subr.bf16.mxu0 %v5637_v20  ;;  %v4011_v20 = vld [vmem:[%s6468_s16] sm:$0xff] }
 0xc63   : > { %5592 = vmatpush3.bf16.msra.mxu0 %v5591_v31 }
 0xc66   : > { %5385 = vmatmul.mubr.msk.f32.vlgmr.msra.gmra.mrb[32].mxu0 %vm724_vm0, %v3929_v22 }
 0xd29   : > { %v4007_v33 = vpop.f32.mrb[34].mxu1  ;;  %v4088_v34 = vpop.f32.mrb[30].mxu0 }
 0xd2a   : > { %v5338_v36 = vpop.f32.mrb[35].mxu1  ;;  %v5357_v37 = vpop.f32.mrb[31].mxu0  ;;  %5358 = vmatprep.subr.mxu1 %v4088_v34 }
 0xd2b   : > { %5359 = vmatpush3.msra.mxu1 %v4088_v34 }
 0xd2c   : > { %5361 = vmatmul.mubr.msk.f32.vlgmr.msra.gmra.mrb[36].mxu1 %vm1357_vm4, %v4730_v35  ;;  %5363 = vmatprep.subr.mxu1 %v4007_v33 }
 0xd2d   : > { %5364 = vmatpush3.msra.mxu1 %v4007_v33  ;;  %5365 = vmatprep.mubr.msk.f32.mxu1 %vm1357_vm4, %v4011_v20 }
 0xd34   : > { %5366 = vmatmul.mubr.msk.f32.vlgmr.msra.gmra.mrb[36].mxu1 %vm1357_vm4, %v4012_v38 }
 0xd35   : > { %5389 = vmatprep.mubr.msk.f32.mxu1 %vm1357_vm4, %v4744_v39 }
 0xd39   : > { %v4332_v40 = vpop.f32.mrb[32].mxu0 }
 0xd3a   : > { %v5386_v42 = vpop.f32.mrb[33].mxu0  ;;  %5387 = vmatprep.subr.mxu1 %v4332_v40 }
 0xd3b   : > { %5388 = vmatpush3.msra.mxu1 %v4332_v40 }
 0xd3c   : > { %5390 = vmatmul.mubr.msk.f32.vlgmr.msra.gmra.mrb[36].mxu1 %vm1357_vm4, %v4745_v41 }
 0xe0f   : > { %v5391_v44 = vpop.f32.mrb[36].mxu1 }
 0xe10   : > { %v4430_v45 = vadd.f32 %v5391_v44, %v4748_v43  ;;  %v4411_v46 = vpop.f32.mrb[37].mxu1 }
 0xe11   : > { %v4429_v47 = vadd.f32 %v4748_v43, %v4411_v46 }
 0xe12   : > { %4432 = vst.msk [vmem:[%s703_s1 + $0x8] sm:$0xff] %vm724_vm0, %v4430_v45 }
 0xe13   : > { %4431 = vst.msk [vmem:[%s703_s1] sm:$0xff] %vm724_vm0, %v4429_v47 }
 0xe14 PF: > { %s32_s2 = sadd.s32 1, %s5635_s2  }
 0xe15   : > { %p29_p4 = scmp.ge.s32.totalorder %s32_s2, 4  }
 0xe17   :  { %31 = sbr.rel (!%p29_p4) target bundleno = 8 (0x8), region = 184 }

</bundles_post_ra>
